<compile_context>
chip_gen: v5e
topology: v5e:2x2
jax: 0.10.0
libtpu: 0.0.40
codegen_flags: <defaults>
</compile_context>

<pallas_src>
import jax
import jax.numpy as jnp
from jax.experimental import pallas as pl
from jax.experimental.pallas import tpu as pltpu


def _round_up(n, m):
    return (n + m - 1) // m * m


def autoencoder_kernel(x_ref,
                       w1_ref, b1_ref,
                       w2_ref, b2_ref,
                       w3_ref, b3_ref,
                       w4_ref, b4_ref,
                       o_ref):
    """Fused 4-layer MLP (Linear+ReLU x4) on one (TB, Dp) batch tile.

    bf16 MXU matmuls with f32 accumulation; bias-add + ReLU in f32 on the VPU."""
    h = x_ref[...]  # bf16 tile

    h = jnp.dot(h, w1_ref[...], preferred_element_type=jnp.float32) + b1_ref[...]
    h = jnp.maximum(h, 0.0).astype(jnp.bfloat16)

    h = jnp.dot(h, w2_ref[...], preferred_element_type=jnp.float32) + b2_ref[...]
    h = jnp.maximum(h, 0.0).astype(jnp.bfloat16)

    h = jnp.dot(h, w3_ref[...], preferred_element_type=jnp.float32) + b3_ref[...]
    h = jnp.maximum(h, 0.0).astype(jnp.bfloat16)

    h = jnp.dot(h, w4_ref[...], preferred_element_type=jnp.float32) + b4_ref[...]
    o_ref[...] = jnp.maximum(h, 0.0).astype(o_ref.dtype)


def prepare_params(params):
    """Pad every feature dim to a multiple of 128 (lane-dense) and cast weights to bf16.

    Called ONCE at init - removes per-call weight re-padding / re-casting HBM traffic.
    Zero padding is numerically exact: zero weight rows/cols + zero bias + ReLU(0)=0."""
    D, H1 = params["w1"].shape
    H2 = params["w2"].shape[1]
    Dp, H1p, H2p = (_round_up(d, 128) for d in (D, H1, H2))

    def pad_w(w, ip, op):
        return jnp.pad(w, ((0, ip - w.shape[0]), (0, op - w.shape[1]))).astype(jnp.bfloat16)

    def pad_b(b, op):
        return jnp.pad(b, ((0, 0), (0, op - b.shape[1]))).astype(jnp.float32)

    return {
        "w1": pad_w(params["w1"], Dp, H1p),  "b1": pad_b(params["b1"], H1p),
        "w2": pad_w(params["w2"], H1p, H2p), "b2": pad_b(params["b2"], H2p),
        "w3": pad_w(params["w3"], H2p, H1p), "b3": pad_b(params["b3"], H1p),
        "w4": pad_w(params["w4"], H1p, Dp),  "b4": pad_b(params["b4"], Dp),
    }


def autoencoder_forward(x_nchw, prep, *, single_buffer_weights=True):
    """x_nchw: (B, C, H, W) float32.  prep: output of prepare_params (padded bf16 weights)."""
    B = x_nchw.shape[0]
    D = x_nchw.shape[1] * x_nchw.shape[2] * x_nchw.shape[3]
    Dp, H1p = prep["w1"].shape
    H2p = prep["w2"].shape[1]
    assert Dp == _round_up(D, 128), "prepared params don't match x's flattened feature dim"

    # Batch tiling: up to 256 rows per step (fills the 256-wide MXU on v6e/v7x).
    # When the padded batch allows, use >= 2 grid steps so the "parallel" axis can
    # shard across v7x's two TensorCores.
    TB_CAP = 256
    Bp8 = _round_up(B, 8)
    if Bp8 < 16:
        TB, Bp = Bp8, Bp8
    elif Bp8 <= 2 * TB_CAP:
        TB = _round_up(-(-Bp8 // 2), 8)
        Bp = 2 * TB
    else:
        TB = TB_CAP
        Bp = _round_up(B, TB)
    grid = (Bp // TB,)

    # bf16 activations: halves the per-step input DMA (weights are VMEM-resident).
    x2d = x_nchw.reshape(B, D).astype(jnp.bfloat16)
    xp = x2d if (Bp == B and Dp == D) else jnp.pad(x2d, ((0, Bp - B), (0, Dp - D)))

    # Weight/bias blocks never change across the grid -> single-buffered, DMA'd once.
    def resident(shape):
        if single_buffer_weights:
            return pl.BlockSpec(shape, lambda i: (0, 0), pipeline_mode=pl.Buffered(1))
        return pl.BlockSpec(shape, lambda i: (0, 0))

    w_elems = sum(prep[k].size for k in ("w1", "w2", "w3", "w4"))
    b_elems = sum(prep[k].size for k in ("b1", "b2", "b3", "b4"))
    flops = 2 * Bp * (Dp * H1p + H1p * H2p + H2p * H1p + H1p * Dp)
    bytes_accessed = (Bp * Dp * 2          # bf16 x in
                      + w_elems * 2        # bf16 weights (read once)
                      + b_elems * 4        # f32 biases
                      + Bp * Dp * 4)       # f32 out

    n_wbuf = 1 if single_buffer_weights else 2
    vmem_est = (2 * TB * Dp * 2                      # x tile, double-buffered, bf16
                + 2 * TB * Dp * 4                    # out tile, double-buffered, f32
                + n_wbuf * (w_elems * 2 + b_elems * 4)   # resident weights / biases
                + 4 * TB * max(Dp, H1p, H2p) * 4)    # in-flight activation headroom

    # Generation-aware VMEM cap: ~48 MiB on v7x (64 MiB phys), ~96 MiB on v5e/v6e (128 MiB).
    try:
        phys_vmem = int(pltpu.get_tpu_info().vmem_capacity_bytes)
    except Exception:  # pragma: no cover - conservative fallback (v7x per-TC VMEM)
        phys_vmem = 64 << 20
    vmem_limit = int(min(max(2 * vmem_est, 8 << 20), (phys_vmem * 3) // 4))

    outp = pl.pallas_call(
        autoencoder_kernel,
        out_shape=jax.ShapeDtypeStruct((Bp, Dp), jnp.float32),
        grid=grid,
        in_specs=[
            pl.BlockSpec((TB, Dp), lambda i: (i, 0)),   # x batch tile (pipelined)
            resident((Dp, H1p)), resident((1, H1p)),    # layer 1
            resident((H1p, H2p)), resident((1, H2p)),   # layer 2
            resident((H2p, H1p)), resident((1, H1p)),   # layer 3
            resident((H1p, Dp)), resident((1, Dp)),     # layer 4
        ],
        out_specs=pl.BlockSpec((TB, Dp), lambda i: (i, 0)),
        compiler_params=pltpu.CompilerParams(
            dimension_semantics=("parallel",),
            vmem_limit_bytes=vmem_limit,
        ),
        cost_estimate=pl.CostEstimate(
            flops=flops, transcendentals=0, bytes_accessed=bytes_accessed),
    )(xp, prep["w1"], prep["b1"], prep["w2"], prep["b2"],
      prep["w3"], prep["b3"], prep["w4"], prep["b4"])

    return outp[:B, :D].reshape(x_nchw.shape)


def init_params(key, input_dim, hidden_dim1, hidden_dim2):
    """Deterministic synthetic parameters (f32). Weight layout: (in, out)."""
    ks = jax.random.split(key, 8)

    def w(k, i, o):
        return jax.random.normal(k, (i, o), jnp.float32) * (1.0 / jnp.sqrt(i))

    def b(k, o):
        return jax.random.normal(k, (1, o), jnp.float32) * 0.01

    return {
        "w1": w(ks[0], input_dim, hidden_dim1),   "b1": b(ks[1], hidden_dim1),
        "w2": w(ks[2], hidden_dim1, hidden_dim2), "b2": b(ks[3], hidden_dim2),
        "w3": w(ks[4], hidden_dim2, hidden_dim1), "b3": b(ks[5], hidden_dim1),
        "w4": w(ks[6], hidden_dim1, input_dim),   "b4": b(ks[7], input_dim),
    }


def reference_forward_f32(x_nchw, p):
    """Plain-JAX f32 reference mirroring the PyTorch module exactly."""
    B = x_nchw.shape[0]
    h = x_nchw.reshape(B, -1)
    h = jnp.maximum(h @ p["w1"] + p["b1"], 0.0)
    h = jnp.maximum(h @ p["w2"] + p["b2"], 0.0)
    h = jnp.maximum(h @ p["w3"] + p["b3"], 0.0)
    h = jnp.maximum(h @ p["w4"] + p["b4"], 0.0)
    return h.reshape(x_nchw.shape)


def reference_forward_bf16(x_nchw, p):
    """Same math at the kernel's precision (bf16 matmul operands, f32 accumulation)."""
    B = x_nchw.shape[0]
    bf = jnp.bfloat16

    def layer(h, w, b):
        y = jnp.dot(h.astype(bf), w.astype(bf),
                    preferred_element_type=jnp.float32) + b
        return jnp.maximum(y, 0.0)

    h = x_nchw.reshape(B, -1).astype(bf).astype(jnp.float32)   # match bf16 kernel input
    h = layer(h, p["w1"], p["b1"])
    h = layer(h, p["w2"], p["b2"])
    h = layer(h, p["w3"], p["b3"])
    h = layer(h, p["w4"], p["b4"])
    return h.reshape(x_nchw.shape)


if __name__ == "__main__":
    key = jax.random.PRNGKey(0)
    k_x, k_p = jax.random.split(key)

    # Small shapes consistent with the module's flatten-then-MLP forward:
    # x: (B=2, C=4, H=16, W=16) -> input_dim = 1024, hidden1 = 128, hidden2 = 64
    B, C, H, W = 2, 4, 16, 16
    input_dim = C * H * W
    hidden_dim1, hidden_dim2 = 128, 64

    x = jax.random.normal(k_x, (B, C, H, W), jnp.float32)
    params = init_params(k_p, input_dim, hidden_dim1, hidden_dim2)
    prep = prepare_params(params)   # padding + bf16 cast hoisted out of the hot path

    fwd = jax.jit(autoencoder_forward, static_argnames=("single_buffer_weights",))
    try:
        out = jax.block_until_ready(fwd(x, prep, single_buffer_weights=True))
    except Exception:
        # Fallback if single-buffered (Buffered(1)) resident blocks are unsupported.
        out = jax.block_until_ready(fwd(x, prep, single_buffer_weights=False))

    assert out.shape == x.shape

    # Primary check: matches the reference at the kernel's matmul precision.
    ref_bf16 = reference_forward_bf16(x, params)
    assert jnp.allclose(out, ref_bf16, atol=2e-2, rtol=2e-2), "mismatch vs bf16-precision reference"

    # Sanity check vs the pure-f32 PyTorch-equivalent reference (bf16 operands loosen tolerance).
    ref_f32 = reference_forward_f32(x, params)
    assert float(jnp.max(jnp.abs(out - ref_f32))) < 0.25, "mismatch vs f32 reference"

    print("KERNEL_OK")
</pallas_src>

<mosaic_0001>
module attributes {stable_mosaic.version = 11 : i64} {
  func.func @autoencoder_kernel(%arg0: i32, %arg1: memref<8x1024xbf16, #tpu.memory_space<vmem>>, %arg2: memref<1024x128xbf16, #tpu.memory_space<vmem>>, %arg3: memref<1x128xf32, #tpu.memory_space<vmem>>, %arg4: memref<128x128xbf16, #tpu.memory_space<vmem>>, %arg5: memref<1x128xf32, #tpu.memory_space<vmem>>, %arg6: memref<128x128xbf16, #tpu.memory_space<vmem>>, %arg7: memref<1x128xf32, #tpu.memory_space<vmem>>, %arg8: memref<128x1024xbf16, #tpu.memory_space<vmem>>, %arg9: memref<1x1024xf32, #tpu.memory_space<vmem>>, %arg10: memref<8x1024xf32, #tpu.memory_space<vmem>>) attributes {dimension_semantics = [#tpu.dimension_semantics<parallel>], iteration_bounds = array<i64: 1>, scalar_prefetch = 0 : i64, scratch_operands = 0 : i64, tpu.core_type = #tpu.core_type<tc>, window_params = [{transform_indices = @transform_0, window_bounds = array<i64: 8, 1024>}, {pipeline_mode = #tpu.pipeline_mode<synchronous>, transform_indices = @transform_1, window_bounds = array<i64: 1024, 128>}, {pipeline_mode = #tpu.pipeline_mode<synchronous>, transform_indices = @transform_2, window_bounds = array<i64: 1, 128>}, {pipeline_mode = #tpu.pipeline_mode<synchronous>, transform_indices = @transform_3, window_bounds = array<i64: 128, 128>}, {pipeline_mode = #tpu.pipeline_mode<synchronous>, transform_indices = @transform_4, window_bounds = array<i64: 1, 128>}, {pipeline_mode = #tpu.pipeline_mode<synchronous>, transform_indices = @transform_5, window_bounds = array<i64: 128, 128>}, {pipeline_mode = #tpu.pipeline_mode<synchronous>, transform_indices = @transform_6, window_bounds = array<i64: 1, 128>}, {pipeline_mode = #tpu.pipeline_mode<synchronous>, transform_indices = @transform_7, window_bounds = array<i64: 128, 1024>}, {pipeline_mode = #tpu.pipeline_mode<synchronous>, transform_indices = @transform_8, window_bounds = array<i64: 1, 1024>}, {transform_indices = @transform_9, window_bounds = array<i64: 8, 1024>}]} {
    %c0 = arith.constant 0 : index
    %c0_0 = arith.constant 0 : index
    %0 = vector.load %arg1[%c0, %c0_0] : memref<8x1024xbf16, #tpu.memory_space<vmem>>, vector<8x1024xbf16>
    %c0_1 = arith.constant 0 : index
    %c0_2 = arith.constant 0 : index
    %1 = vector.load %arg2[%c0_1, %c0_2] : memref<1024x128xbf16, #tpu.memory_space<vmem>>, vector<1024x128xbf16>
    %cst = arith.constant dense<0.000000e+00> : vector<8x128xf32>
    %2 = tpu.matmul %0, %1, %cst {dimension_numbers = #tpu.dot_dimension_numbers<[1], [0], [0], [1], [0, 0, 1, 1], [], []>} : vector<8x1024xbf16>, vector<1024x128xbf16>, vector<8x128xf32> -> vector<8x128xf32>
    %c0_3 = arith.constant 0 : index
    %c0_4 = arith.constant 0 : index
    %3 = vector.load %arg3[%c0_3, %c0_4] : memref<1x128xf32, #tpu.memory_space<vmem>>, vector<1x128xf32>
    %4 = vector.broadcast %3 : vector<1x128xf32> to vector<8x128xf32>
    %5 = arith.addf %2, %4 : vector<8x128xf32>
    %cst_5 = arith.constant 0.000000e+00 : f32
    %6 = vector.broadcast %cst_5 : f32 to vector<8x128xf32>
    %7 = arith.maximumf %5, %6 : vector<8x128xf32>
    %8 = arith.truncf %7 : vector<8x128xf32> to vector<8x128xbf16>
    %c0_6 = arith.constant 0 : index
    %c0_7 = arith.constant 0 : index
    %9 = vector.load %arg4[%c0_6, %c0_7] : memref<128x128xbf16, #tpu.memory_space<vmem>>, vector<128x128xbf16>
    %cst_8 = arith.constant dense<0.000000e+00> : vector<8x128xf32>
    %10 = tpu.matmul %8, %9, %cst_8 {dimension_numbers = #tpu.dot_dimension_numbers<[1], [0], [0], [1], [0, 0, 1, 1], [], []>} : vector<8x128xbf16>, vector<128x128xbf16>, vector<8x128xf32> -> vector<8x128xf32>
    %c0_9 = arith.constant 0 : index
    %c0_10 = arith.constant 0 : index
    %11 = vector.load %arg5[%c0_9, %c0_10] : memref<1x128xf32, #tpu.memory_space<vmem>>, vector<1x128xf32>
    %12 = vector.broadcast %11 : vector<1x128xf32> to vector<8x128xf32>
    %13 = arith.addf %10, %12 : vector<8x128xf32>
    %cst_11 = arith.constant 0.000000e+00 : f32
    %14 = vector.broadcast %cst_11 : f32 to vector<8x128xf32>
    %15 = arith.maximumf %13, %14 : vector<8x128xf32>
    %16 = arith.truncf %15 : vector<8x128xf32> to vector<8x128xbf16>
    %c0_12 = arith.constant 0 : index
    %c0_13 = arith.constant 0 : index
    %17 = vector.load %arg6[%c0_12, %c0_13] : memref<128x128xbf16, #tpu.memory_space<vmem>>, vector<128x128xbf16>
    %cst_14 = arith.constant dense<0.000000e+00> : vector<8x128xf32>
    %18 = tpu.matmul %16, %17, %cst_14 {dimension_numbers = #tpu.dot_dimension_numbers<[1], [0], [0], [1], [0, 0, 1, 1], [], []>} : vector<8x128xbf16>, vector<128x128xbf16>, vector<8x128xf32> -> vector<8x128xf32>
    %c0_15 = arith.constant 0 : index
    %c0_16 = arith.constant 0 : index
    %19 = vector.load %arg7[%c0_15, %c0_16] : memref<1x128xf32, #tpu.memory_space<vmem>>, vector<1x128xf32>
    %20 = vector.broadcast %19 : vector<1x128xf32> to vector<8x128xf32>
    %21 = arith.addf %18, %20 : vector<8x128xf32>
    %cst_17 = arith.constant 0.000000e+00 : f32
    %22 = vector.broadcast %cst_17 : f32 to vector<8x128xf32>
    %23 = arith.maximumf %21, %22 : vector<8x128xf32>
    %24 = arith.truncf %23 : vector<8x128xf32> to vector<8x128xbf16>
    %c0_18 = arith.constant 0 : index
    %c0_19 = arith.constant 0 : index
    %25 = vector.load %arg8[%c0_18, %c0_19] : memref<128x1024xbf16, #tpu.memory_space<vmem>>, vector<128x1024xbf16>
    %cst_20 = arith.constant dense<0.000000e+00> : vector<8x1024xf32>
    %26 = tpu.matmul %24, %25, %cst_20 {dimension_numbers = #tpu.dot_dimension_numbers<[1], [0], [0], [1], [0, 0, 1, 1], [], []>} : vector<8x128xbf16>, vector<128x1024xbf16>, vector<8x1024xf32> -> vector<8x1024xf32>
    %c0_21 = arith.constant 0 : index
    %c0_22 = arith.constant 0 : index
    %27 = vector.load %arg9[%c0_21, %c0_22] : memref<1x1024xf32, #tpu.memory_space<vmem>>, vector<1x1024xf32>
    %28 = vector.broadcast %27 : vector<1x1024xf32> to vector<8x1024xf32>
    %29 = arith.addf %26, %28 : vector<8x1024xf32>
    %cst_23 = arith.constant 0.000000e+00 : f32
    %30 = vector.broadcast %cst_23 : f32 to vector<8x1024xf32>
    %31 = arith.maximumf %29, %30 : vector<8x1024xf32>
    %c0_24 = arith.constant 0 : index
    %c0_25 = arith.constant 0 : index
    %32 = vector.load %arg10[%c0_24, %c0_25] : memref<8x1024xf32, #tpu.memory_space<vmem>>, vector<8x1024xf32>
    tpu.vector_store %arg10[%c0_24, %c0_25], %31 {strides = array<i32>} : memref<8x1024xf32, #tpu.memory_space<vmem>>, vector<8x1024xf32>,
    return
  }
  func.func @transform_0(%arg0: i32) -> (i32, i32) {
    %c0_i32 = arith.constant 0 : i32
    %c0_i32_0 = arith.constant 0 : i32
    return %arg0, %c0_i32 : i32, i32
  }
  func.func @transform_1(%arg0: i32) -> (i32, i32) {
    %c0_i32 = arith.constant 0 : i32
    %c0_i32_0 = arith.constant 0 : i32
    %c0_i32_1 = arith.constant 0 : i32
    return %c0_i32, %c0_i32_0 : i32, i32
  }
  func.func @transform_2(%arg0: i32) -> (i32, i32) {
    %c0_i32 = arith.constant 0 : i32
    %c0_i32_0 = arith.constant 0 : i32
    %c0_i32_1 = arith.constant 0 : i32
    return %c0_i32, %c0_i32_0 : i32, i32
  }
  func.func @transform_3(%arg0: i32) -> (i32, i32) {
    %c0_i32 = arith.constant 0 : i32
    %c0_i32_0 = arith.constant 0 : i32
    %c0_i32_1 = arith.constant 0 : i32
    return %c0_i32, %c0_i32_0 : i32, i32
  }
  func.func @transform_4(%arg0: i32) -> (i32, i32) {
    %c0_i32 = arith.constant 0 : i32
    %c0_i32_0 = arith.constant 0 : i32
    %c0_i32_1 = arith.constant 0 : i32
    return %c0_i32, %c0_i32_0 : i32, i32
  }
  func.func @transform_5(%arg0: i32) -> (i32, i32) {
    %c0_i32 = arith.constant 0 : i32
    %c0_i32_0 = arith.constant 0 : i32
    %c0_i32_1 = arith.constant 0 : i32
    return %c0_i32, %c0_i32_0 : i32, i32
  }
  func.func @transform_6(%arg0: i32) -> (i32, i32) {
    %c0_i32 = arith.constant 0 : i32
    %c0_i32_0 = arith.constant 0 : i32
    %c0_i32_1 = arith.constant 0 : i32
    return %c0_i32, %c0_i32_0 : i32, i32
  }
  func.func @transform_7(%arg0: i32) -> (i32, i32) {
    %c0_i32 = arith.constant 0 : i32
    %c0_i32_0 = arith.constant 0 : i32
    %c0_i32_1 = arith.constant 0 : i32
    return %c0_i32, %c0_i32_0 : i32, i32
  }
  func.func @transform_8(%arg0: i32) -> (i32, i32) {
    %c0_i32 = arith.constant 0 : i32
    %c0_i32_0 = arith.constant 0 : i32
    %c0_i32_1 = arith.constant 0 : i32
    return %c0_i32, %c0_i32_0 : i32, i32
  }
  func.func @transform_9(%arg0: i32) -> (i32, i32) {
    %c0_i32 = arith.constant 0 : i32
    %c0_i32_0 = arith.constant 0 : i32
    return %arg0, %c0_i32 : i32, i32
  }
}

module attributes {stable_mosaic.version = 11 : i64} {
  func.func @autoencoder_kernel(%arg0: i32, %arg1: memref<8x1024xbf16, #tpu.memory_space<vmem>>, %arg2: memref<1024x128xbf16, #tpu.memory_space<vmem>>, %arg3: memref<1x128xf32, #tpu.memory_space<vmem>>, %arg4: memref<128x128xbf16, #tpu.memory_space<vmem>>, %arg5: memref<1x128xf32, #tpu.memory_space<vmem>>, %arg6: memref<128x128xbf16, #tpu.memory_space<vmem>>, %arg7: memref<1x128xf32, #tpu.memory_space<vmem>>, %arg8: memref<128x1024xbf16, #tpu.memory_space<vmem>>, %arg9: memref<1x1024xf32, #tpu.memory_space<vmem>>, %arg10: memref<8x1024xf32, #tpu.memory_space<vmem>>) attributes {dimension_semantics = [#tpu.dimension_semantics<parallel>], iteration_bounds = array<i64: 1>, scalar_prefetch = 0 : i64, scratch_operands = 0 : i64, tpu.core_type = #tpu.core_type<tc>, window_params = [{transform_indices = @transform_0, window_bounds = array<i64: 8, 1024>}, {pipeline_mode = #tpu.pipeline_mode<synchronous>, transform_indices = @transform_1, window_bounds = array<i64: 1024, 128>}, {pipeline_mode = #tpu.pipeline_mode<synchronous>, transform_indices = @transform_2, window_bounds = array<i64: 1, 128>}, {pipeline_mode = #tpu.pipeline_mode<synchronous>, transform_indices = @transform_3, window_bounds = array<i64: 128, 128>}, {pipeline_mode = #tpu.pipeline_mode<synchronous>, transform_indices = @transform_4, window_bounds = array<i64: 1, 128>}, {pipeline_mode = #tpu.pipeline_mode<synchronous>, transform_indices = @transform_5, window_bounds = array<i64: 128, 128>}, {pipeline_mode = #tpu.pipeline_mode<synchronous>, transform_indices = @transform_6, window_bounds = array<i64: 1, 128>}, {pipeline_mode = #tpu.pipeline_mode<synchronous>, transform_indices = @transform_7, window_bounds = array<i64: 128, 1024>}, {pipeline_mode = #tpu.pipeline_mode<synchronous>, transform_indices = @transform_8, window_bounds = array<i64: 1, 1024>}, {transform_indices = @transform_9, window_bounds = array<i64: 8, 1024>}]} {
    %c0 = arith.constant 0 : index
    %c0_0 = arith.constant 0 : index
    %0 = vector.load %arg1[%c0, %c0_0] : memref<8x1024xbf16, #tpu.memory_space<vmem>>, vector<8x1024xbf16>
    %c0_1 = arith.constant 0 : index
    %c0_2 = arith.constant 0 : index
    %1 = vector.load %arg2[%c0_1, %c0_2] : memref<1024x128xbf16, #tpu.memory_space<vmem>>, vector<1024x128xbf16>
    %cst = arith.constant dense<0.000000e+00> : vector<8x128xf32>
    %2 = tpu.matmul %0, %1, %cst {dimension_numbers = #tpu.dot_dimension_numbers<[1], [0], [0], [1], [0, 0, 1, 1], [], []>} : vector<8x1024xbf16>, vector<1024x128xbf16>, vector<8x128xf32> -> vector<8x128xf32>
    %c0_3 = arith.constant 0 : index
    %c0_4 = arith.constant 0 : index
    %3 = vector.load %arg3[%c0_3, %c0_4] : memref<1x128xf32, #tpu.memory_space<vmem>>, vector<1x128xf32>
    %4 = vector.broadcast %3 : vector<1x128xf32> to vector<8x128xf32>
    %5 = arith.addf %2, %4 : vector<8x128xf32>
    %cst_5 = arith.constant 0.000000e+00 : f32
    %6 = vector.broadcast %cst_5 : f32 to vector<8x128xf32>
    %7 = arith.maximumf %5, %6 : vector<8x128xf32>
    %8 = arith.truncf %7 : vector<8x128xf32> to vector<8x128xbf16>
    %c0_6 = arith.constant 0 : index
    %c0_7 = arith.constant 0 : index
    %9 = vector.load %arg4[%c0_6, %c0_7] : memref<128x128xbf16, #tpu.memory_space<vmem>>, vector<128x128xbf16>
    %cst_8 = arith.constant dense<0.000000e+00> : vector<8x128xf32>
    %10 = tpu.matmul %8, %9, %cst_8 {dimension_numbers = #tpu.dot_dimension_numbers<[1], [0], [0], [1], [0, 0, 1, 1], [], []>} : vector<8x128xbf16>, vector<128x128xbf16>, vector<8x128xf32> -> vector<8x128xf32>
    %c0_9 = arith.constant 0 : index
    %c0_10 = arith.constant 0 : index
    %11 = vector.load %arg5[%c0_9, %c0_10] : memref<1x128xf32, #tpu.memory_space<vmem>>, vector<1x128xf32>
    %12 = vector.broadcast %11 : vector<1x128xf32> to vector<8x128xf32>
    %13 = arith.addf %10, %12 : vector<8x128xf32>
    %cst_11 = arith.constant 0.000000e+00 : f32
    %14 = vector.broadcast %cst_11 : f32 to vector<8x128xf32>
    %15 = arith.maximumf %13, %14 : vector<8x128xf32>
    %16 = arith.truncf %15 : vector<8x128xf32> to vector<8x128xbf16>
    %c0_12 = arith.constant 0 : index
    %c0_13 = arith.constant 0 : index
    %17 = vector.load %arg6[%c0_12, %c0_13] : memref<128x128xbf16, #tpu.memory_space<vmem>>, vector<128x128xbf16>
    %cst_14 = arith.constant dense<0.000000e+00> : vector<8x128xf32>
    %18 = tpu.matmul %16, %17, %cst_14 {dimension_numbers = #tpu.dot_dimension_numbers<[1], [0], [0], [1], [0, 0, 1, 1], [], []>} : vector<8x128xbf16>, vector<128x128xbf16>, vector<8x128xf32> -> vector<8x128xf32>
    %c0_15 = arith.constant 0 : index
    %c0_16 = arith.constant 0 : index
    %19 = vector.load %arg7[%c0_15, %c0_16] : memref<1x128xf32, #tpu.memory_space<vmem>>, vector<1x128xf32>
    %20 = vector.broadcast %19 : vector<1x128xf32> to vector<8x128xf32>
    %21 = arith.addf %18, %20 : vector<8x128xf32>
    %cst_17 = arith.constant 0.000000e+00 : f32
    %22 = vector.broadcast %cst_17 : f32 to vector<8x128xf32>
    %23 = arith.maximumf %21, %22 : vector<8x128xf32>
    %24 = arith.truncf %23 : vector<8x128xf32> to vector<8x128xbf16>
    %c0_18 = arith.constant 0 : index
    %c0_19 = arith.constant 0 : index
    %25 = vector.load %arg8[%c0_18, %c0_19] : memref<128x1024xbf16, #tpu.memory_space<vmem>>, vector<128x1024xbf16>
    %cst_20 = arith.constant dense<0.000000e+00> : vector<8x1024xf32>
    %26 = tpu.matmul %24, %25, %cst_20 {dimension_numbers = #tpu.dot_dimension_numbers<[1], [0], [0], [1], [0, 0, 1, 1], [], []>} : vector<8x128xbf16>, vector<128x1024xbf16>, vector<8x1024xf32> -> vector<8x1024xf32>
    %c0_21 = arith.constant 0 : index
    %c0_22 = arith.constant 0 : index
    %27 = vector.load %arg9[%c0_21, %c0_22] : memref<1x1024xf32, #tpu.memory_space<vmem>>, vector<1x1024xf32>
    %28 = vector.broadcast %27 : vector<1x1024xf32> to vector<8x1024xf32>
    %29 = arith.addf %26, %28 : vector<8x1024xf32>
    %cst_23 = arith.constant 0.000000e+00 : f32
    %30 = vector.broadcast %cst_23 : f32 to vector<8x1024xf32>
    %31 = arith.maximumf %29, %30 : vector<8x1024xf32>
    %c0_24 = arith.constant 0 : index
    %c0_25 = arith.constant 0 : index
    %32 = vector.load %arg10[%c0_24, %c0_25] : memref<8x1024xf32, #tpu.memory_space<vmem>>, vector<8x1024xf32>
    tpu.vector_store %arg10[%c0_24, %c0_25], %31 {strides = array<i32>} : memref<8x1024xf32, #tpu.memory_space<vmem>>, vector<8x1024xf32>,
    return
  }
  func.func @transform_0(%arg0: i32) -> (i32, i32) {
    %c0_i32 = arith.constant 0 : i32
    %c0_i32_0 = arith.constant 0 : i32
    return %arg0, %c0_i32 : i32, i32
  }
  func.func @transform_1(%arg0: i32) -> (i32, i32) {
    %c0_i32 = arith.constant 0 : i32
    %c0_i32_0 = arith.constant 0 : i32
    %c0_i32_1 = arith.constant 0 : i32
    return %c0_i32, %c0_i32_0 : i32, i32
  }
  func.func @transform_2(%arg0: i32) -> (i32, i32) {
    %c0_i32 = arith.constant 0 : i32
    %c0_i32_0 = arith.constant 0 : i32
    %c0_i32_1 = arith.constant 0 : i32
    return %c0_i32, %c0_i32_0 : i32, i32
  }
  func.func @transform_3(%arg0: i32) -> (i32, i32) {
    %c0_i32 = arith.constant 0 : i32
    %c0_i32_0 = arith.constant 0 : i32
    %c0_i32_1 = arith.constant 0 : i32
    return %c0_i32, %c0_i32_0 : i32, i32
  }
  func.func @transform_4(%arg0: i32) -> (i32, i32) {
    %c0_i32 = arith.constant 0 : i32
    %c0_i32_0 = arith.constant 0 : i32
    %c0_i32_1 = arith.constant 0 : i32
    return %c0_i32, %c0_i32_0 : i32, i32
  }
  func.func @transform_5(%arg0: i32) -> (i32, i32) {
    %c0_i32 = arith.constant 0 : i32
    %c0_i32_0 = arith.constant 0 : i32
    %c0_i32_1 = arith.constant 0 : i32
    return %c0_i32, %c0_i32_0 : i32, i32
  }
  func.func @transform_6(%arg0: i32) -> (i32, i32) {
    %c0_i32 = arith.constant 0 : i32
    %c0_i32_0 = arith.constant 0 : i32
    %c0_i32_1 = arith.constant 0 : i32
    return %c0_i32, %c0_i32_0 : i32, i32
  }
  func.func @transform_7(%arg0: i32) -> (i32, i32) {
    %c0_i32 = arith.constant 0 : i32
    %c0_i32_0 = arith.constant 0 : i32
    %c0_i32_1 = arith.constant 0 : i32
    return %c0_i32, %c0_i32_0 : i32, i32
  }
  func.func @transform_8(%arg0: i32) -> (i32, i32) {
    %c0_i32 = arith.constant 0 : i32
    %c0_i32_0 = arith.constant 0 : i32
    %c0_i32_1 = arith.constant 0 : i32
    return %c0_i32, %c0_i32_0 : i32, i32
  }
  func.func @transform_9(%arg0: i32) -> (i32, i32) {
    %c0_i32 = arith.constant 0 : i32
    %c0_i32_0 = arith.constant 0 : i32
    return %arg0, %c0_i32 : i32, i32
  }
}

</mosaic_0001>

<bundles_post_ra>
// kernel: autoencoder_forward.1
= control target key start
LH: loop header
LB: loop body
LE: loop exit
PB: predicated region body
PF: predicated region fallthrough
CT: control target
= control target key end

     0   :  { %14 = vsyncpa [#allocation3], 0  ;;  %s2351_s0 = inlined_call_operand.vmem [shape: bf16[8,1024], index: 0, kind: input, shape index: {}]   ;;  %s2352_s1 = inlined_call_operand.hbm [shape: bf16[1024,128], index: 1, kind: input, shape index: {}]   ;;  %s2353_s2 = inlined_call_operand.vmem [shape: f32[1,128], index: 2, kind: input, shape index: {}]   ;;  %s2354_s3 = inlined_call_operand.vmem [shape: bf16[128,128], index: 3, kind: input, shape index: {}]   ;;  %s2355_s4 = inlined_call_operand.vmem [shape: f32[1,128], index: 4, kind: input, shape index: {}]   ;;  %s2356_s5 = inlined_call_operand.vmem [shape: bf16[128,128], index: 5, kind: input, shape index: {}]   ;;  %s2357_s6 = inlined_call_operand.vmem [shape: f32[1,128], index: 6, kind: input, shape index: {}]   ;;  %s2358_s7 = inlined_call_operand.hbm [shape: bf16[128,1024], index: 7, kind: input, shape index: {}]   ;;  %s2359_s8 = inlined_call_operand.vmem [shape: f32[1,1024], index: 8, kind: input, shape index: {}]   ;;  %s2360_s9 = inlined_call_operand.vmem [shape: f32[8,1024], index: 9, kind: output, shape index: {}]  }
   0x1   :  { %s22_s11 = sshll.u32 %s2352_s1, 4  ;;  %s23_s11 = int_to_ptr.hbm [resolvable:$true] %s22_s11 }
   0x2   :  { %15 = vsyncpa [#allocation5], 0  ;;  %s2193_s12 = smov [#allocation2]   ;;  %s45_s16 = sshll.u32 %s2358_s7, 4  ;;  %s46_s16 = int_to_ptr.hbm [resolvable:$true] %s45_s16 }
   0x3   :  { %s24_s13 = sshll.u32 %s2193_s12, 4  ;;  %s2194_s17 = smov 64   ;;  %s25_s13 = int_to_ptr.vmem [resolvable:$true] %s24_s13 }
   0x4   :  { %s2195_s18 = smov 4   ;;  %s2196_s19 = smov [#allocation4]  }
   0x5   :  { %30 = dma.hbm_to_vmem [thread:$0]  %s23_s11, 8192, %s25_s13, [#allocation3], %s2194_s17, %s2194_s17, %s2195_s18  }
   0x6   :  { %s47_s20 = sshll.u32 %s2196_s19, 4  ;;  %s2197_s21 = smov 512   ;;  %s48_s20 = int_to_ptr.vmem [resolvable:$true] %s47_s20 }
   0x7   :  { %s2198_s22 = smov 32  }
   0x8   :  { %53 = dma.hbm_to_vmem [thread:$0]  %s46_s16, 8192, %s48_s20, [#allocation5], %s2197_s21, %s2197_s21, %s2198_s22  }
   0x9   :  { %2189 = dma.done.wait [#allocation3], 8192  }
   0xa   :  { %2190 = vsyncadd [#allocation3], 4294959104 }
   0xb   :  { %2191 = dma.done.wait [#allocation5], 8192  }
   0xc   :  { %2192 = vsyncadd [#allocation5], 4294959104  ;;  %v1995_v0 = vld [vmem:[#allocation2 + $0x38] sm:$0xff]  ;;  %v1994_v4 = vld [vmem:[#allocation2 + $0x30] sm:$0xff] }
   0xd   :  { %v2003_v1 = vld [vmem:[#allocation2 + $0x78] sm:$0xff]  ;;  %612 = vmatpush.bf16.msra.mxu0 %v1995_v0  ;;  %v2002_v5 = vld [vmem:[#allocation2 + $0x70] sm:$0xff]  ;;  %v1993_v8 = vld [vmem:[#allocation2 + $0x28] sm:$0xff] }
   0xe   :  { %v2011_v2 = vld [vmem:[#allocation2 + $0xb8] sm:$0xff]  ;;  %625 = vmatpush.bf16.msra.mxu1 %v2003_v1  ;;  %v2010_v6 = vld [vmem:[#allocation2 + $0xb0] sm:$0xff]  ;;  %v2001_v9 = vld [vmem:[#allocation2 + $0x68] sm:$0xff] }
   0xf   :  { %v2019_v3 = vld [vmem:[#allocation2 + $0xf8] sm:$0xff]  ;;  %638 = vmatpush.bf16.msra.mxu2 %v2011_v2  ;;  %v2018_v7 = vld [vmem:[#allocation2 + $0xf0] sm:$0xff]  ;;  %v2009_v10 = vld [vmem:[#allocation2 + $0xa8] sm:$0xff] }
  0x10   :  { %651 = vmatpush.bf16.msra.mxu3 %v2019_v3  ;;  %v2017_v11 = vld [vmem:[#allocation2 + $0xe8] sm:$0xff]  ;;  %v1992_v12 = vld [vmem:[#allocation2 + $0x20] sm:$0xff]  ;;  %v1991_v16 = vld [vmem:[#allocation2 + $0x18] sm:$0xff] }
  0x11   :  { %613 = vmatpush.bf16.msra.mxu0 %v1994_v4  ;;  %v2000_v13 = vld [vmem:[#allocation2 + $0x60] sm:$0xff]  ;;  %v1999_v17 = vld [vmem:[#allocation2 + $0x58] sm:$0xff]  ;;  %v1990_v20 = vld [vmem:[#allocation2 + $0x10] sm:$0xff] }
  0x12   :  { %626 = vmatpush.bf16.msra.mxu1 %v2002_v5  ;;  %v2008_v14 = vld [vmem:[#allocation2 + $0xa0] sm:$0xff]  ;;  %v2007_v18 = vld [vmem:[#allocation2 + $0x98] sm:$0xff]  ;;  %v1998_v21 = vld [vmem:[#allocation2 + $0x50] sm:$0xff] }
  0x13   :  { %639 = vmatpush.bf16.msra.mxu2 %v2010_v6  ;;  %v2016_v15 = vld [vmem:[#allocation2 + $0xe0] sm:$0xff]  ;;  %v2015_v19 = vld [vmem:[#allocation2 + $0xd8] sm:$0xff]  ;;  %v2006_v22 = vld [vmem:[#allocation2 + $0x90] sm:$0xff] }
  0x14   :  { %652 = vmatpush.bf16.msra.mxu3 %v2018_v7  ;;  %v2014_v23 = vld [vmem:[#allocation2 + $0xd0] sm:$0xff]  ;;  %v1989_v24 = vld [vmem:[#allocation2 + $0x8] sm:$0xff]  ;;  %v64_v29 = vld [vmem:[%s2351_s0] sm:$0xff] }
  0x15   :  { %614 = vmatpush.bf16.msra.mxu0 %v1993_v8  ;;  %v1997_v25 = vld [vmem:[#allocation2 + $0x48] sm:$0xff]  ;;  %v1988_v30 = vld [vmem:[#allocation2] sm:$0xff]  ;;  %v204_v33 = vunpack.c.l.b16 %v64_v29  ;;  %v205_v37 = vunpack.c.h.b16 %v64_v29  ;;  %v2027_v38 = vld [vmem:[#allocation2 + $0x138] sm:$0xff] }
  0x16   :  { %627 = vmatpush.bf16.msra.mxu1 %v2001_v9  ;;  %v2005_v26 = vld [vmem:[#allocation2 + $0x88] sm:$0xff]  ;;  %v1996_v31 = vld [vmem:[#allocation2 + $0x40] sm:$0xff]  ;;  %v2035_v39 = vld [vmem:[#allocation2 + $0x178] sm:$0xff] }
  0x17   :  { %640 = vmatpush.bf16.msra.mxu2 %v2009_v10  ;;  %v2013_v27 = vld [vmem:[#allocation2 + $0xc8] sm:$0xff]  ;;  %v2004_v34 = vld [vmem:[#allocation2 + $0x80] sm:$0xff]  ;;  %v2043_v40 = vld [vmem:[#allocation2 + $0x1b8] sm:$0xff]  ;;  %v212_v43 = vpack.c.b16 %v204_v33, %v204_v33  ;;  %v213_v45 = vpack.c.b16 %v205_v37, %v205_v37 }
  0x18   :  { %653 = vmatpush.bf16.msra.mxu3 %v2017_v11  ;;  %v65_v28 = vld [vmem:[%s2351_s0 + $0x8] sm:$0xff]  ;;  %v2012_v35 = vld [vmem:[#allocation2 + $0xc0] sm:$0xff]  ;;  %v2051_v41 = vld [vmem:[#allocation2 + $0x1f8] sm:$0xff] }
  0x19   :  { %615 = vmatpush.bf16.msra.mxu0 %v1992_v12  ;;  %v206_v32 = vunpack.c.l.b16 %v65_v28  ;;  %v207_v36 = vunpack.c.h.b16 %v65_v28  ;;  %v2026_v46 = vld [vmem:[#allocation2 + $0x130] sm:$0xff]  ;;  %v2025_v50 = vld [vmem:[#allocation2 + $0x128] sm:$0xff]  ;;  %v2024_v54 = vld [vmem:[#allocation2 + $0x120] sm:$0xff] }
  0x1a   :  { %628 = vmatpush.bf16.msra.mxu1 %v2000_v13  ;;  %v2034_v47 = vld [vmem:[#allocation2 + $0x170] sm:$0xff]  ;;  %v2033_v51 = vld [vmem:[#allocation2 + $0x168] sm:$0xff]  ;;  %v2032_v55 = vld [vmem:[#allocation2 + $0x160] sm:$0xff] }
  0x1b   :  { %641 = vmatpush.bf16.msra.mxu2 %v2008_v14  ;;  %v214_v42 = vpack.c.b16 %v206_v32, %v206_v32  ;;  %v215_v44 = vpack.c.b16 %v207_v36, %v207_v36  ;;  %v2042_v48 = vld [vmem:[#allocation2 + $0x1b0] sm:$0xff]  ;;  %v2041_v52 = vld [vmem:[#allocation2 + $0x1a8] sm:$0xff]  ;;  %v2040_v56 = vld [vmem:[#allocation2 + $0x1a0] sm:$0xff] }
  0x1c   :  { %654 = vmatpush.bf16.msra.mxu3 %v2016_v15  ;;  %v2050_v49 = vld [vmem:[#allocation2 + $0x1f0] sm:$0xff]  ;;  %v2049_v53 = vld [vmem:[#allocation2 + $0x1e8] sm:$0xff]  ;;  %v2048_v57 = vld [vmem:[#allocation2 + $0x1e0] sm:$0xff] }
  0x1d   :  { %616 = vmatpush.bf16.msra.mxu0 %v1991_v16  ;;  %v2023_v58 = vld [vmem:[#allocation2 + $0x118] sm:$0xff]  ;;  %v2022_v62 = vld [vmem:[#allocation2 + $0x110] sm:$0xff]  ;;  %v2021_v2 = vld [vmem:[#allocation2 + $0x108] sm:$0xff] }
  0x1e   :  { %629 = vmatpush.bf16.msra.mxu1 %v1999_v17  ;;  %v2031_v59 = vld [vmem:[#allocation2 + $0x158] sm:$0xff]  ;;  %v2030_v63 = vld [vmem:[#allocation2 + $0x150] sm:$0xff]  ;;  %v2029_v3 = vld [vmem:[#allocation2 + $0x148] sm:$0xff] }
  0x1f   :  { %642 = vmatpush.bf16.msra.mxu2 %v2007_v18  ;;  %v2039_v60 = vld [vmem:[#allocation2 + $0x198] sm:$0xff]  ;;  %v2038_v0 = vld [vmem:[#allocation2 + $0x190] sm:$0xff]  ;;  %v2037_v5 = vld [vmem:[#allocation2 + $0x188] sm:$0xff] }
  0x20   :  { %655 = vmatpush.bf16.msra.mxu3 %v2015_v19  ;;  %v2047_v61 = vld [vmem:[#allocation2 + $0x1d8] sm:$0xff]  ;;  %v2046_v1 = vld [vmem:[#allocation2 + $0x1d0] sm:$0xff]  ;;  %v2045_v6 = vld [vmem:[#allocation2 + $0x1c8] sm:$0xff] }
  0x21   :  { %617 = vmatpush.bf16.msra.mxu0 %v1990_v20  ;;  %v66_v4 = vld [vmem:[%s2351_s0 + $0x10] sm:$0xff]  ;;  %v67_v7 = vld [vmem:[%s2351_s0 + $0x18] sm:$0xff]  ;;  %v2020_v10 = vld [vmem:[#allocation2 + $0x100] sm:$0xff] }
  0x22   :  { %630 = vmatpush.bf16.msra.mxu1 %v1998_v21  ;;  %v208_v8 = vunpack.c.l.b16 %v66_v4  ;;  %v209_v9 = vunpack.c.h.b16 %v66_v4  ;;  %v2028_v11 = vld [vmem:[#allocation2 + $0x140] sm:$0xff]  ;;  %v210_v12 = vunpack.c.l.b16 %v67_v7  ;;  %v211_v13 = vunpack.c.h.b16 %v67_v7  ;;  %v2059_v20 = vld [vmem:[%s2354_s3 + $0x38] sm:$0xff]  ;;  %v2058_v21 = vld [vmem:[%s2354_s3 + $0x30] sm:$0xff] }
  0x23   :  { %643 = vmatpush.bf16.msra.mxu2 %v2006_v22  ;;  %v2036_v14 = vld [vmem:[#allocation2 + $0x180] sm:$0xff]  ;;  %v2057_v22 = vld [vmem:[%s2354_s3 + $0x28] sm:$0xff] }
  0x24   :  { %656 = vmatpush.bf16.msra.mxu3 %v2014_v23  ;;  %v2044_v15 = vld [vmem:[#allocation2 + $0x1c0] sm:$0xff]  ;;  %v216_v16 = vpack.c.b16 %v208_v8, %v208_v8  ;;  %v217_v17 = vpack.c.b16 %v209_v9, %v209_v9  ;;  %v218_v18 = vpack.c.b16 %v210_v12, %v210_v12  ;;  %v219_v19 = vpack.c.b16 %v211_v13, %v211_v13  ;;  %v2053_v28 = vld [vmem:[%s2354_s3 + $0x8] sm:$0xff] }
  0x25   :  { %618 = vmatpush.bf16.msra.mxu0 %v1989_v24  ;;  %v2056_v23 = vld [vmem:[%s2354_s3 + $0x20] sm:$0xff]  ;;  %v2055_v24 = vld [vmem:[%s2354_s3 + $0x18] sm:$0xff]  ;;  %v1966_v4 = vld [vmem:[#allocation4 + $0x1c8] sm:$0xf] }
  0x26   :  { %631 = vmatpush.bf16.msra.mxu1 %v1997_v25  ;;  %v2052_v32 = vld [vmem:[%s2354_s3] sm:$0xff]  ;;  %v2125_v8 = vld [vmem:[#allocation4 + $0x1cc] sm:$0xf] }
  0x27   :  { %644 = vmatpush.bf16.msra.mxu2 %v2005_v26  ;;  %v2054_v26 = vld [vmem:[%s2354_s3 + $0x10] sm:$0xff]  ;;  %v1968_v9 = vld [vmem:[#allocation4 + $0x1e8] sm:$0xf0]  ;;  %v2120_v12 = vld [vmem:[#allocation4 + $0x19c] sm:$0xf0] }
  0x28   :  { %657 = vmatpush.bf16.msra.mxu3 %v2013_v27  ;;  %v2116_v13 = vld [vmem:[#allocation4 + $0x184] sm:$0xf] }
  0x29   :  { %619 = vmatpush.bf16.msra.mxu0 %v1988_v30 }
  0x2a   :  { %632 = vmatpush.bf16.msra.mxu1 %v1996_v31 }
  0x2b   :  { %645 = vmatpush.bf16.msra.mxu2 %v2004_v34  ;;  %v2138_v34 = vld [vmem:[%s2353_s2] ss:$0 sm:$0xff] }
  0x2c   :  { %658 = vmatpush.bf16.msra.mxu3 %v2012_v35  ;;  %620 = vmatmul.bf16.vlgmr.msra.gmra.mxu0 %v212_v43  ;;  %v2067_v35 = vld [vmem:[%s2356_s5 + $0x38] sm:$0xff] }
  0x2d   :  { %664 = vmatpush.bf16.msrb.mxu0 %v2027_v38  ;;  %633 = vmatmul.bf16.vlgmr.msra.gmra.mxu1 %v213_v45  ;;  %v2066_v38 = vld [vmem:[%s2356_s5 + $0x30] sm:$0xff] }
  0x2e   :  { %677 = vmatpush.bf16.msrb.mxu1 %v2035_v39  ;;  %646 = vmatmul.bf16.vlgmr.msra.gmra.mxu2 %v214_v42  ;;  %v2064_v42 = vld [vmem:[%s2356_s5 + $0x20] sm:$0xff] }
  0x2f   :  { %690 = vmatpush.bf16.msrb.mxu2 %v2043_v40  ;;  %659 = vmatmul.bf16.vlgmr.msra.gmra.mxu3 %v215_v44  ;;  %v2065_v40 = vld [vmem:[%s2356_s5 + $0x28] sm:$0xff]  ;;  %v2063_v44 = vld [vmem:[%s2356_s5 + $0x18] sm:$0xff] }
  0x30   :  { %703 = vmatpush.bf16.msrb.mxu3 %v2051_v41 }
  0x31   :  { %665 = vmatpush.bf16.msrb.mxu0 %v2026_v46 }
  0x32   :  { %678 = vmatpush.bf16.msrb.mxu1 %v2034_v47 }
  0x33   :  { %691 = vmatpush.bf16.msrb.mxu2 %v2042_v48 }
  0x34   :  { %704 = vmatpush.bf16.msrb.mxu3 %v2050_v49  ;;  %v2062_v49 = vld [vmem:[%s2356_s5 + $0x10] sm:$0xff] }
  0x35   :  { %666 = vmatpush.bf16.msrb.mxu0 %v2025_v50 }
  0x36   :  { %679 = vmatpush.bf16.msrb.mxu1 %v2033_v51 }
  0x37   :  { %692 = vmatpush.bf16.msrb.mxu2 %v2041_v52 }
  0x38   :  { %705 = vmatpush.bf16.msrb.mxu3 %v2049_v53 }
  0x39   :  { %667 = vmatpush.bf16.msrb.mxu0 %v2024_v54 }
  0x3a   :  { %680 = vmatpush.bf16.msrb.mxu1 %v2032_v55 }
  0x3b   :  { %693 = vmatpush.bf16.msrb.mxu2 %v2040_v56 }
  0x3c   :  { %706 = vmatpush.bf16.msrb.mxu3 %v2048_v57 }
  0x3d   :  { %668 = vmatpush.bf16.msrb.mxu0 %v2023_v58 }
  0x3e   :  { %681 = vmatpush.bf16.msrb.mxu1 %v2031_v59 }
  0x3f   :  { %694 = vmatpush.bf16.msrb.mxu2 %v2039_v60 }
  0x40   :  { %707 = vmatpush.bf16.msrb.mxu3 %v2047_v61  ;;  %v2061_v61 = vld [vmem:[%s2356_s5 + $0x8] sm:$0xff] }
  0x41   :  { %669 = vmatpush.bf16.msrb.mxu0 %v2022_v62  ;;  %v2060_v62 = vld [vmem:[%s2356_s5] sm:$0xff] }
  0x42   :  { %682 = vmatpush.bf16.msrb.mxu1 %v2030_v63  ;;  %v1958_v63 = vld [vmem:[#allocation4 + $0x1c0] sm:$0xf] }
  0x43   :  { %695 = vmatpush.bf16.msrb.mxu2 %v2038_v0  ;;  %v2128_v0 = vld [vmem:[#allocation4 + $0x1dc] sm:$0xf0] }
  0x44   :  { %708 = vmatpush.bf16.msrb.mxu3 %v2046_v1  ;;  %v2124_v1 = vld [vmem:[#allocation4 + $0x1c4] sm:$0xf] }
  0x45   :  { %670 = vmatpush.bf16.msrb.mxu0 %v2021_v2  ;;  %v1959_v2 = vor.u32 %v2128_v0, %v1958_v63  ;;  %v1806_v63 = vld [vmem:[#allocation4 + $0x88] sm:$0xf] }
  0x46   :  { %683 = vmatpush.bf16.msrb.mxu1 %v2029_v3  ;;  %v1960_v3 = vld [vmem:[#allocation4 + $0x1e0] sm:$0xf0]  ;;  %v2089_v0 = vld [vmem:[#allocation4 + $0xa4] sm:$0xf0] }
  0x47   :  { %696 = vmatpush.bf16.msrb.mxu2 %v2037_v5  ;;  %v2129_v5 = vld [vmem:[#allocation4 + $0x1e4] sm:$0xf0] }
  0x48   :  { %709 = vmatpush.bf16.msrb.mxu3 %v2045_v6  ;;  %v1963_v6 = vor.u32 %v2124_v1, %v1960_v3  ;;  %v1967_v7 = vor.u32 %v2129_v5, %v1966_v4  ;;  %v2085_v1 = vld [vmem:[#allocation4 + $0x8c] sm:$0xf]  ;;  %v2139_v3 = vld [vmem:[%s2355_s4] ss:$0 sm:$0xff] }
  0x49   :  { %671 = vmatpush.bf16.msrb.mxu0 %v2020_v10  ;;  %v1926_v10 = vld [vmem:[#allocation4 + $0x180] sm:$0xf] }
  0x4a   :  { %684 = vmatpush.bf16.msrb.mxu1 %v2028_v11  ;;  %v1971_v11 = vor.u32 %v2125_v8, %v1968_v9  ;;  %v2080_v8 = vld [vmem:[#allocation4 + $0x5c] sm:$0xf0]  ;;  %v2076_v9 = vld [vmem:[#allocation4 + $0x44] sm:$0xf] }
  0x4b   :  { %697 = vmatpush.bf16.msrb.mxu2 %v2036_v14  ;;  %v1928_v14 = vld [vmem:[#allocation4 + $0x1a0] sm:$0xf0] }
  0x4c   :  { %710 = vmatpush.bf16.msrb.mxu3 %v2044_v15  ;;  %672 = vmatmul.bf16.vlgmr.msrb.gmra.mxu0 %v216_v16  ;;  %v1927_v15 = vor.u32 %v2120_v12, %v1926_v10  ;;  %v1931_v16 = vor.u32 %v2116_v13, %v1928_v14  ;;  %v1774_v12 = vld [vmem:[#allocation4 + $0x48] sm:$0xf]  ;;  %v2077_v14 = vld [vmem:[#allocation4 + $0x4c] sm:$0xf] }
  0x4d   :  { %685 = vmatmul.bf16.vlgmr.msrb.gmra.mxu1 %v217_v17  ;;  %786 = vmatpush.bf16.msra.mxu0 %v2059_v20  ;;  %v1934_v17 = vld [vmem:[#allocation4 + $0x188] sm:$0xf] }
  0x4e   :  { %698 = vmatmul.bf16.vlgmr.msrb.gmra.mxu2 %v218_v18  ;;  %869 = vmatpush.bf16.msra.mxu1 %v2067_v35  ;;  %v2121_v18 = vld [vmem:[#allocation4 + $0x1a4] sm:$0xf0]  ;;  %v2104_v35 = vld [vmem:[#allocation4 + $0x11c] sm:$0xf0] }
  0x4f   :  { %711 = vmatmul.bf16.vlgmr.msrb.gmra.mxu3 %v219_v19  ;;  %1286 = vmatpush.bf16.msra.mxu2 %v1959_v2  ;;  %v2117_v19 = vld [vmem:[#allocation4 + $0x18c] sm:$0xf]  ;;  %v1935_v20 = vor.u32 %v2121_v18, %v1934_v17  ;;  %v2081_v13 = vld [vmem:[#allocation4 + $0x64] sm:$0xf0]  ;;  %v1734_v17 = vld [vmem:[#allocation4] sm:$0xf] }
  0x50   :  { %1299 = vmatpush.bf16.msra.mxu3 %v1963_v6  ;;  %v1808_v2 = vld [vmem:[#allocation4 + $0xa8] sm:$0xf0]  ;;  %v1807_v6 = vor.u32 %v2089_v0, %v1806_v63  ;;  %v2072_v18 = vld [vmem:[#allocation4 + $0x1c] sm:$0xf0]  ;;  %v2110_v63 = vld [vmem:[#allocation4 + $0x154] sm:$0xf] }
  0x51   :  { %787 = vmatpush.bf16.msra.mxu0 %v2058_v21  ;;  %v1936_v21 = vld [vmem:[#allocation4 + $0x1a8] sm:$0xf0]  ;;  %v1811_v10 = vor.u32 %v2085_v1, %v1808_v2  ;;  %v1912_v1 = vld [vmem:[#allocation4 + $0x170] sm:$0xf0]  ;;  %v1918_v2 = vld [vmem:[#allocation4 + $0x158] sm:$0xf] }
  0x52   :  { %870 = vmatpush.bf16.msra.mxu1 %v2066_v38  ;;  %v1864_v38 = vld [vmem:[#allocation4 + $0x120] sm:$0xf0] }
  0x53   :  { %1287 = vmatpush.bf16.msra.mxu2 %v1927_v15  ;;  %v1776_v15 = vld [vmem:[#allocation4 + $0x68] sm:$0xf0] }
  0x54   :  { %1300 = vmatpush.bf16.msra.mxu3 %v1931_v16 }
  0x55   :  { %788 = vmatpush.bf16.msra.mxu0 %v2057_v22  ;;  %v1894_v22 = vld [vmem:[#allocation4 + $0x140] sm:$0xf] }
  0x56   :  { %871 = vmatpush.bf16.msra.mxu1 %v2065_v40  ;;  %v2105_v40 = vld [vmem:[#allocation4 + $0x124] sm:$0xf0] }
  0x59   :  { %789 = vmatpush.bf16.msra.mxu0 %v2056_v23  ;;  %v2112_v23 = vld [vmem:[#allocation4 + $0x15c] sm:$0xf0] }
  0x5a   :  { %872 = vmatpush.bf16.msra.mxu1 %v2064_v42  ;;  %v1872_v42 = vld [vmem:[#allocation4 + $0x128] sm:$0xf0] }
  0x5d   :  { %790 = vmatpush.bf16.msra.mxu0 %v2055_v24  ;;  %v1939_v24 = vor.u32 %v2117_v19, %v1936_v21  ;;  %v2068_v19 = vld [vmem:[#allocation4 + $0x4] sm:$0xf] }
  0x5e   :  { %873 = vmatpush.bf16.msra.mxu1 %v2063_v44 }
  0x61   :  { %791 = vmatpush.bf16.msra.mxu0 %v2054_v26  ;;  %v1896_v26 = vld [vmem:[#allocation4 + $0x160] sm:$0xf0] }
  0x62   :  { %874 = vmatpush.bf16.msra.mxu1 %v2062_v49 }
  0x65   :  { %792 = vmatpush.bf16.msra.mxu0 %v2053_v28  ;;  %v1895_v28 = vor.u32 %v2112_v23, %v1894_v22  ;;  %v1775_v22 = vor.u32 %v2081_v13, %v1774_v12  ;;  %v1736_v23 = vld [vmem:[#allocation4 + $0x20] sm:$0xf0]  ;;  %v1880_v13 = vld [vmem:[#allocation4 + $0x130] sm:$0xf0] }
  0x66   :  { %875 = vmatpush.bf16.msra.mxu1 %v2061_v61 }
  0x67   :  { %1288 = vmatpush.bf16.msra.mxu2 %v1895_v28  ;;  %v2069_v28 = vld [vmem:[#allocation4 + $0xc] sm:$0xf] }
  0x69   :  { %793 = vmatpush.bf16.msra.mxu0 %v2052_v32 }
  0x6a   :  { %876 = vmatpush.bf16.msra.mxu1 %v2060_v62  ;;  %v1800_v62 = vld [vmem:[#allocation4 + $0xa0] sm:$0xf0] }
  0x6d   :  { %1312 = vmatpush.bf16.msrb.mxu0 %v1967_v7  ;;  %v1766_v7 = vld [vmem:[#allocation4 + $0x40] sm:$0xf] }
  0x6e   :  { %1325 = vmatpush.bf16.msrb.mxu1 %v1971_v11  ;;  %v1768_v11 = vld [vmem:[#allocation4 + $0x60] sm:$0xf0]  ;;  %v1767_v16 = vor.u32 %v2080_v8, %v1766_v7  ;;  %v1920_v7 = vld [vmem:[#allocation4 + $0x178] sm:$0xf0] }
  0x6f   :  { %v1771_v21 = vor.u32 %v2076_v9, %v1768_v11  ;;  %v1878_v9 = vld [vmem:[#allocation4 + $0x110] sm:$0xf]  ;;  %v2102_v11 = vld [vmem:[#allocation4 + $0x114] sm:$0xf] }
  0x71   :  { %1313 = vmatpush.bf16.msrb.mxu0 %v1935_v20 }
  0x72   :  { %1326 = vmatpush.bf16.msrb.mxu1 %v1939_v24  ;;  %v1742_v24 = vld [vmem:[#allocation4 + $0x8] sm:$0xf] }
  0xa9   :  { %v621_v25 = vpop.f32.mrf.mxu0 }
  0xaa   :  { %v634_v27 = vpop.f32.mrf.mxu1  ;;  %v622_v39 = vadd.f32 %v2138_v34, %v621_v25  ;;  %v2108_v25 = vld [vmem:[#allocation4 + $0x144] sm:$0xf]  ;;  %v1862_v34 = vld [vmem:[#allocation4 + $0x100] sm:$0xf] }
  0xab   :  { %v1899_v32 = vor.u32 %v2108_v25, %v1896_v26  ;;  %v2073_v25 = vld [vmem:[#allocation4 + $0x24] sm:$0xf0] }
  0xac   :  { %v635_v41 = vadd.f32 %v634_v27, %v622_v39  ;;  %v1902_v27 = vld [vmem:[#allocation4 + $0x148] sm:$0xf] }
  0xad   :  { %v1870_v39 = vld [vmem:[#allocation4 + $0x108] sm:$0xf]  ;;  %1301 = vmatpush.bf16.msra.mxu3 %v1899_v32  ;;  %v2126_v32 = vld [vmem:[#allocation4 + $0x1d4] sm:$0xf] }
  0xb1   :  { %v647_v29 = vpop.f32.mrf.mxu2  ;;  %v623_v31 = vpop.f32.mrf.mxu0 }
  0xb2   :  { %v660_v30 = vpop.f32.mrf.mxu3  ;;  %v636_v33 = vpop.f32.mrf.mxu1  ;;  %v648_v43 = vadd.f32 %v647_v29, %v635_v41  ;;  %v2113_v29 = vld [vmem:[#allocation4 + $0x164] sm:$0xf0]  ;;  %v1904_v31 = vld [vmem:[#allocation4 + $0x168] sm:$0xf0] }
  0xb3   :  { %v1903_v33 = vor.u32 %v2113_v29, %v1902_v27  ;;  %v2101_v41 = vld [vmem:[#allocation4 + $0x10c] sm:$0xf]  ;;  %v1779_v27 = vor.u32 %v2077_v14, %v1776_v15  ;;  %v1886_v14 = vld [vmem:[#allocation4 + $0x118] sm:$0xf] }
  0xb4   :  { %v661_v45 = vadd.f32 %v660_v30, %v648_v43  ;;  %v2109_v30 = vld [vmem:[#allocation4 + $0x14c] sm:$0xf]  ;;  %v1863_v43 = vor.u32 %v2104_v35, %v1862_v34  ;;  %v1875_v49 = vor.u32 %v2101_v41, %v1872_v42  ;;  %v1735_v35 = vor.u32 %v2072_v18, %v1734_v17  ;;  %v1984_v41 = vld [vmem:[#allocation4 + $0x1f8] sm:$0xf0]  ;;  %v2107_v15 = vld [vmem:[#allocation4 + $0x134] sm:$0xf0] }
  0xb5   :  { %1314 = vmatpush.bf16.msrb.mxu0 %v1903_v33  ;;  %v1744_v29 = vld [vmem:[#allocation4 + $0x28] sm:$0xf0]  ;;  %v1976_v33 = vld [vmem:[#allocation4 + $0x1f0] sm:$0xf0]  ;;  %v1887_v17 = vor.u32 %v2107_v15, %v1886_v14  ;;  %v2103_v18 = vld [vmem:[#allocation4 + $0x11c] sm:$0xf] }
  0xb6   :  { %1289 = vmatpush.bf16.msra.mxu2 %v1863_v43  ;;  %v1747_v43 = vor.u32 %v2069_v28, %v1744_v29 }
  0xb9   :  { %v649_v36 = vpop.f32.mrf.mxu2 }
  0xba   :  { %v662_v37 = vpop.f32.mrf.mxu3  ;;  %v2100_v36 = vld [vmem:[#allocation4 + $0x104] sm:$0xf] }
  0xbb   :  { %v1907_v37 = vor.u32 %v2109_v30, %v1904_v31  ;;  %v1867_v44 = vor.u32 %v2100_v36, %v1864_v38  ;;  %v1974_v30 = vld [vmem:[#allocation4 + $0x1d0] sm:$0xf]  ;;  %v1982_v36 = vld [vmem:[#allocation4 + $0x1d8] sm:$0xf]  ;;  %v1739_v38 = vor.u32 %v2068_v19, %v1736_v23  ;;  %v1888_v19 = vld [vmem:[#allocation4 + $0x138] sm:$0xf0] }
  0xbc   :  { %v2130_v31 = vld [vmem:[#allocation4 + $0x1ec] sm:$0xf0]  ;;  %v2094_v23 = vld [vmem:[#allocation4 + $0xd4] sm:$0xf] }
  0xbd   :  { %1327 = vmatpush.bf16.msrb.mxu1 %v1907_v37  ;;  %1302 = vmatpush.bf16.msra.mxu3 %v1867_v44  ;;  %v2131_v37 = vld [vmem:[#allocation4 + $0x1f4] sm:$0xf0]  ;;  %v1975_v44 = vor.u32 %v2130_v31, %v1974_v30  ;;  %v2095_v30 = vld [vmem:[#allocation4 + $0xdc] sm:$0xf] }
  0xbe   :  { %v1856_v31 = vld [vmem:[#allocation4 + $0xf8] sm:$0xf0] }
  0xc1   :  { %1328 = vmatpush.bf16.msrb.mxu1 %v1875_v49  ;;  %v2118_v49 = vld [vmem:[#allocation4 + $0x194] sm:$0xf] }
  0xc9   :  { %v673_v46 = vpop.f32.mrf.mxu0 }
  0xca   :  { %v686_v47 = vpop.f32.mrf.mxu1  ;;  %v674_v48 = vadd.f32 %v673_v46, %v661_v45  ;;  %v1871_v45 = vor.u32 %v2105_v40, %v1870_v39  ;;  %v1830_v46 = vld [vmem:[#allocation4 + $0xc0] sm:$0xf]  ;;  %v1743_v39 = vor.u32 %v2073_v25, %v1742_v24  ;;  %v2127_v40 = vld [vmem:[#allocation4 + $0x1dc] sm:$0xf]  ;;  %v1848_v25 = vld [vmem:[#allocation4 + $0xf0] sm:$0xf0] }
  0xcb   :  { %v1851_v28 = vor.u32 %v2094_v23, %v1848_v25 }
  0xcc   :  { %v687_v50 = vadd.f32 %v686_v47, %v674_v48  ;;  %v2096_v47 = vld [vmem:[#allocation4 + $0xdc] sm:$0xf0]  ;;  %v2092_v48 = vld [vmem:[#allocation4 + $0xc4] sm:$0xf]  ;;  %1315 = vmatpush.bf16.msrb.mxu0 %v1871_v45  ;;  %v1979_v45 = vor.u32 %v2126_v32, %v1976_v33  ;;  %v1814_v32 = vld [vmem:[#allocation4 + $0x90] sm:$0xf]  ;;  %v1859_v33 = vor.u32 %v2095_v30, %v1856_v31 }
  0xd1   :  { %v699_v51 = vpop.f32.mrf.mxu2  ;;  %v675_v54 = vpop.f32.mrf.mxu0 }
  0xd2   :  { %v712_v52 = vpop.f32.mrf.mxu3  ;;  %v700_v53 = vadd.f32 %v699_v51, %v687_v50  ;;  %v688_v55 = vpop.f32.mrf.mxu1  ;;  %v1832_v50 = vld [vmem:[#allocation4 + $0xe0] sm:$0xf0]  ;;  %v1838_v51 = vld [vmem:[#allocation4 + $0xc8] sm:$0xf]  ;;  %v1840_v54 = vld [vmem:[#allocation4 + $0xe8] sm:$0xf0] }
  0xd3   :  { %v1831_v55 = vor.u32 %v2096_v47, %v1830_v46  ;;  %v1983_v46 = vor.u32 %v2131_v37, %v1982_v36  ;;  %v1942_v47 = vld [vmem:[#allocation4 + $0x190] sm:$0xf]  ;;  %v1816_v36 = vld [vmem:[#allocation4 + $0xb0] sm:$0xf0] }
  0xd4   :  { %v713_v56 = vadd.f32 %v712_v52, %v700_v53  ;;  %v2097_v52 = vld [vmem:[#allocation4 + $0xe4] sm:$0xf0]  ;;  %v2093_v53 = vld [vmem:[#allocation4 + $0xcc] sm:$0xf] }
  0xd5   :  { %v1843_v61 = vor.u32 %v2093_v53, %v1840_v54  ;;  %1290 = vmatpush.bf16.msra.mxu2 %v1831_v55  ;;  %v2123_v53 = vld [vmem:[#allocation4 + $0x1b4] sm:$0xf0]  ;;  %v2119_v55 = vld [vmem:[#allocation4 + $0x19c] sm:$0xf] }
  0xd6   :  { %v716_v57 = vmax.f32 %v713_v56, 0.0  ;;  %v1835_v56 = vor.u32 %v2092_v48, %v1832_v50  ;;  %v2122_v48 = vld [vmem:[#allocation4 + $0x1ac] sm:$0xf0]  ;;  %v1987_v50 = vor.u32 %v2127_v40, %v1984_v41  ;;  %v2091_v40 = vld [vmem:[#allocation4 + $0xb4] sm:$0xf0] }
  0xd7   :  { %1329 = vmatpush.bf16.msrb.mxu1 %v1843_v61  ;;  %v1910_v61 = vld [vmem:[#allocation4 + $0x150] sm:$0xf]  ;;  %v2087_v41 = vld [vmem:[#allocation4 + $0x9c] sm:$0xf] }
  0xd8   :  { %v717_v58 = vpack.c.bf16 %v716_v57, %v716_v57  ;;  %v1839_v57 = vor.u32 %v2097_v52, %v1838_v51  ;;  %1303 = vmatpush.bf16.msra.mxu3 %v1835_v56  ;;  %v1944_v51 = vld [vmem:[#allocation4 + $0x1b0] sm:$0xf0]  ;;  %v1950_v52 = vld [vmem:[#allocation4 + $0x198] sm:$0xf]  ;;  %v1952_v56 = vld [vmem:[#allocation4 + $0x1b8] sm:$0xf0] }
  0xd9   :  { %v701_v59 = vpop.f32.mrf.mxu2 }
  0xda   :  { %v714_v60 = vpop.f32.mrf.mxu3  ;;  %794 = vmatmul.bf16.vlgmr.msra.gmra.mxu0 %v717_v58  ;;  %v1798_v58 = vld [vmem:[#allocation4 + $0x80] sm:$0xf] }
  0xdb   :  { %v2088_v59 = vld [vmem:[#allocation4 + $0x9c] sm:$0xf0]  ;;  %v2084_v60 = vld [vmem:[#allocation4 + $0x84] sm:$0xf]  ;;  %1316 = vmatpush.bf16.msrb.mxu0 %v1839_v57  ;;  %1330 = vmatpush.bf16.msrb.mxu1 %v1811_v10  ;;  %v1943_v57 = vor.u32 %v2122_v48, %v1942_v47  ;;  %v2106_v10 = vld [vmem:[#allocation4 + $0x12c] sm:$0xf0] }
  0xdc   :  { %v1799_v4 = vor.u32 %v2088_v59, %v1798_v58  ;;  %v1803_v5 = vor.u32 %v2084_v60, %v1800_v62  ;;  %v1947_v58 = vor.u32 %v2118_v49, %v1944_v51  ;;  %v1951_v59 = vor.u32 %v2123_v53, %v1950_v52  ;;  %v2114_v62 = vld [vmem:[#allocation4 + $0x16c] sm:$0xf0]  ;;  %v2078_v47 = vld [vmem:[#allocation4 + $0x54] sm:$0xf]  ;;  %v1790_v49 = vld [vmem:[#allocation4 + $0x58] sm:$0xf] }
  0xdd   :  { %v1955_v60 = vor.u32 %v2119_v55, %v1952_v56  ;;  %v1911_v0 = vor.u32 %v2114_v62, %v1910_v61  ;;  %v1879_v12 = vor.u32 %v2106_v10, %v1878_v9  ;;  %v1784_v48 = vld [vmem:[#allocation4 + $0x70] sm:$0xf0]  ;;  %v2083_v51 = vld [vmem:[#allocation4 + $0x74] sm:$0xf0]  ;;  %v2079_v52 = vld [vmem:[#allocation4 + $0x5c] sm:$0xf] }
  0xde   :  { %1291 = vmatpush.bf16.msra.mxu2 %v1799_v4  ;;  %1304 = vmatpush.bf16.msra.mxu3 %v1803_v5  ;;  %v1915_v4 = vor.u32 %v2110_v63, %v1912_v1  ;;  %v1792_v53 = vld [vmem:[#allocation4 + $0x78] sm:$0xf0]  ;;  %v1791_v55 = vor.u32 %v2083_v51, %v1790_v49  ;;  %v1750_v56 = vld [vmem:[#allocation4 + $0x10] sm:$0xf]  ;;  %v1758_v61 = vld [vmem:[#allocation4 + $0x18] sm:$0xf] }
  0xdf   :  { %1317 = vmatpush.bf16.msrb.mxu0 %v1807_v6  ;;  %1331 = vmatpush.bf16.msrb.mxu1 %v1779_v27  ;;  %v2111_v6 = vld [vmem:[#allocation4 + $0x15c] sm:$0xf]  ;;  %v2099_v27 = vld [vmem:[#allocation4 + $0xf4] sm:$0xf0] }
  0xe0   :  { %v1923_v8 = vor.u32 %v2111_v6, %v1920_v7  ;;  %v2075_v62 = vld [vmem:[#allocation4 + $0x34] sm:$0xf0]  ;;  %v2071_v63 = vld [vmem:[#allocation4 + $0x1c] sm:$0xf] }
  0xe2   :  { %1292 = vmatpush.bf16.msra.mxu2 %v1767_v16  ;;  %1305 = vmatpush.bf16.msra.mxu3 %v1771_v21  ;;  %v1883_v16 = vor.u32 %v2102_v11, %v1880_v13  ;;  %v1846_v21 = vld [vmem:[#allocation4 + $0xd0] sm:$0xf]  ;;  %v948_v11 = vld [vmem:[%s2359_s8] sm:$0xff] }
  0xe3   :  { %1318 = vmatpush.bf16.msrb.mxu0 %v1775_v22  ;;  %1332 = vmatpush.bf16.msrb.mxu1 %v1747_v43  ;;  %v2098_v22 = vld [vmem:[#allocation4 + $0xec] sm:$0xf0]  ;;  %v1824_v43 = vld [vmem:[#allocation4 + $0xb8] sm:$0xf0]  ;;  %v953_v13 = vperm.slane %v948_v11, 3 }
  0xe4   :  { %v1847_v24 = vor.u32 %v2098_v22, %v1846_v21 }
  0xe6   :  { %1293 = vmatpush.bf16.msra.mxu2 %v1735_v35  ;;  %1306 = vmatpush.bf16.msra.mxu3 %v1739_v38  ;;  %v2086_v35 = vld [vmem:[#allocation4 + $0x94] sm:$0xf] }
  0xe7   :  { %1319 = vmatpush.bf16.msrb.mxu0 %v1743_v39  ;;  %v1819_v38 = vor.u32 %v2086_v35, %v1816_v36  ;;  %v1822_v39 = vld [vmem:[#allocation4 + $0x98] sm:$0xf] }
  0xea   :  { %1338 = vmatpush.bf16.msrb.mxu2 %v1975_v44  ;;  %1351 = vmatpush.bf16.msrb.mxu3 %v1979_v45  ;;  %v1782_v44 = vld [vmem:[#allocation4 + $0x50] sm:$0xf] }
  0xeb   :  { %1364 = vmatpush.bf16.msra.mxu0 %v1983_v46  ;;  %v2082_v45 = vld [vmem:[#allocation4 + $0x6c] sm:$0xf0]  ;;  %v1827_v46 = vor.u32 %v2087_v41, %v1824_v43 }
  0xee   :  { %1339 = vmatpush.bf16.msrb.mxu2 %v1943_v57  ;;  %1352 = vmatpush.bf16.msrb.mxu3 %v1947_v58  ;;  %v2074_v57 = vld [vmem:[#allocation4 + $0x2c] sm:$0xf0]  ;;  %v2070_v58 = vld [vmem:[#allocation4 + $0x14] sm:$0xf] }
  0xef   :  { %1365 = vmatpush.bf16.msra.mxu0 %v1951_v59  ;;  %v1795_v59 = vor.u32 %v2079_v52, %v1792_v53  ;;  %v1751_v1 = vor.u32 %v2074_v57, %v1750_v56 }
  0xf2   :  { %1340 = vmatpush.bf16.msrb.mxu2 %v1911_v0  ;;  %1353 = vmatpush.bf16.msrb.mxu3 %v1915_v4  ;;  %v1760_v0 = vld [vmem:[#allocation4 + $0x38] sm:$0xf0] }
  0xf3   :  { %v1763_v4 = vor.u32 %v2071_v63, %v1760_v0 }
  0xf6   :  { %1341 = vmatpush.bf16.msrb.mxu2 %v1879_v12  ;;  %1354 = vmatpush.bf16.msrb.mxu3 %v1883_v16  ;;  %v952_v12 = vperm.slane %v948_v11, 2 }
  0xfa   :  { %1342 = vmatpush.bf16.msrb.mxu2 %v1847_v24  ;;  %1355 = vmatpush.bf16.msrb.mxu3 %v1851_v28 }
  0xfe   :  { %1356 = vmatpush.bf16.msrb.mxu3 %v1819_v38  ;;  %v954_v38 = vperm.slane %v948_v11, 4 }
 0x157   :  { %v795_v20 = vpop.f32.mrf.mxu0 }
 0x158   :  { %v796_v26 = vadd.f32 %v2139_v3, %v795_v20  ;;  %v2115_v3 = vld [vmem:[#allocation4 + $0x174] sm:$0xf0]  ;;  %v1891_v20 = vor.u32 %v2103_v18, %v1888_v19  ;;  %v950_v18 = vperm.slane %v948_v11, 0  ;;  %v951_v19 = vperm.slane %v948_v11, 1 }
 0x159   :  { %v1919_v5 = vor.u32 %v2115_v3, %v1918_v2  ;;  %v1759_v3 = vor.u32 %v2075_v62, %v1758_v61 }
 0x15a   :  { %v799_v34 = vmax.f32 %v796_v26, 0.0  ;;  %v1854_v26 = vld [vmem:[#allocation4 + $0xd8] sm:$0xf] }
 0x15b   :  { %1366 = vmatpush.bf16.msra.mxu0 %v1919_v5  ;;  %v1855_v29 = vor.u32 %v2099_v27, %v1854_v26  ;;  %v2140_v5 = vld [vmem:[%s2357_s6] ss:$0 sm:$0xff] }
 0x15c   :  { %v800_v42 = vpack.c.bf16 %v799_v34, %v799_v34  ;;  %v2090_v34 = vld [vmem:[#allocation4 + $0xac] sm:$0xf0] }
 0x15d   :  { %v1815_v37 = vor.u32 %v2090_v34, %v1814_v32  ;;  %v956_v32 = vperm.slane %v948_v11, 6 }
 0x15e   :  { %877 = vmatmul.bf16.vlgmr.msra.gmra.mxu1 %v800_v42  ;;  %v1823_v42 = vor.u32 %v2091_v40, %v1822_v39  ;;  %v955_v39 = vperm.slane %v948_v11, 5 }
 0x15f   :  { %v797_v54 = vpop.f32.mrf.mxu0  ;;  %1377 = vmatpush.bf16.msra.mxu1 %v1987_v50  ;;  %1367 = vmatpush.bf16.msra.mxu0 %v1887_v17  ;;  %v1783_v50 = vor.u32 %v2082_v45, %v1782_v44 }
 0x160   :  { %1343 = vmatpush.bf16.msrb.mxu2 %v1815_v37  ;;  %v1787_v54 = vor.u32 %v2078_v47, %v1784_v48 }
 0x162   :  { %1357 = vmatpush.bf16.msrb.mxu3 %v1787_v54 }
 0x163   :  { %1378 = vmatpush.bf16.msra.mxu1 %v1955_v60  ;;  %1368 = vmatpush.bf16.msra.mxu0 %v1855_v29  ;;  %v1752_v60 = vld [vmem:[#allocation4 + $0x30] sm:$0xf0] }
 0x164   :  { %1344 = vmatpush.bf16.msrb.mxu2 %v1783_v50  ;;  %v1755_v2 = vor.u32 %v2070_v58, %v1752_v60 }
 0x166   :  { %1358 = vmatpush.bf16.msrb.mxu3 %v1755_v2 }
 0x167   :  { %1379 = vmatpush.bf16.msra.mxu1 %v1923_v8  ;;  %1369 = vmatpush.bf16.msra.mxu0 %v1823_v42 }
 0x168   :  { %1345 = vmatpush.bf16.msrb.mxu2 %v1751_v1 }
 0x16b   :  { %1380 = vmatpush.bf16.msra.mxu1 %v1891_v20  ;;  %1370 = vmatpush.bf16.msra.mxu0 %v1791_v55 }
 0x16f   :  { %1381 = vmatpush.bf16.msra.mxu1 %v1859_v33  ;;  %1371 = vmatpush.bf16.msra.mxu0 %v1759_v3  ;;  %v957_v33 = vperm.slane %v948_v11, 7 }
 0x173   :  { %1382 = vmatpush.bf16.msra.mxu1 %v1827_v46 }
 0x177   :  { %1383 = vmatpush.bf16.msra.mxu1 %v1795_v59 }
 0x17b   :  { %1384 = vmatpush.bf16.msra.mxu1 %v1763_v4 }
 0x1db   :  { %v878_v6 = vpop.f32.mrf.mxu1 }
 0x1dc   :  { %v879_v7 = vadd.f32 %v2140_v5, %v878_v6 }
 0x1de   :  { %v882_v8 = vmax.f32 %v879_v7, 0.0 }
 0x1e0   :  { %v883_v9 = vpack.c.bf16 %v882_v8, %v882_v8 }
 0x1e2   :  { %1294 = vmatmul.bf16.vlgmr.msra.gmra.mxu2 %v883_v9  ;;  %1307 = vmatmul.bf16.vlgmr.msra.gmra.mxu3 %v883_v9 }
 0x1e3   :  { %1320 = vmatmul.bf16.vlgmr.msrb.gmra.mxu0 %v883_v9  ;;  %1333 = vmatmul.bf16.vlgmr.msrb.gmra.mxu1 %v883_v9  ;;  %v880_v10 = vpop.f32.mrf.mxu1 }
 0x1f2   :  { %1346 = vmatmul.bf16.vlgmr.msrb.gmra.mxu2 %v883_v9  ;;  %1359 = vmatmul.bf16.vlgmr.msrb.gmra.mxu3 %v883_v9 }
 0x1f3   :  { %1372 = vmatmul.bf16.vlgmr.msra.gmra.mxu0 %v883_v9  ;;  %1385 = vmatmul.bf16.vlgmr.msra.gmra.mxu1 %v883_v9 }
 0x260   :  { %v1321_v14 = vpop.f32.mrf.mxu0  ;;  %v1334_v15 = vpop.f32.mrf.mxu1 }
 0x261   :  { %v1322_v16 = vadd.f32 %v1321_v14, %v952_v12  ;;  %v1335_v17 = vadd.f32 %v1334_v15, %v953_v13 }
 0x263   :  { %v1392_v20 = vmax.f32 %v1322_v16, 0.0  ;;  %v1393_v21 = vmax.f32 %v1335_v17, 0.0 }
 0x265   :  { %1400 = vst [vmem:[%s2360_s9 + $0x10] sm:$0xff] %v1392_v20  ;;  %v1295_v22 = vpop.f32.mrf.mxu2  ;;  %v1308_v23 = vpop.f32.mrf.mxu3 }
 0x266   :  { %1401 = vst [vmem:[%s2360_s9 + $0x18] sm:$0xff] %v1393_v21  ;;  %v1296_v24 = vadd.f32 %v1295_v22, %v950_v18  ;;  %v1309_v25 = vadd.f32 %v1308_v23, %v951_v19 }
 0x268   :  { %v1390_v26 = vmax.f32 %v1296_v24, 0.0  ;;  %v1391_v27 = vmax.f32 %v1309_v25, 0.0  ;;  %v1323_v28 = vpop.f32.mrf.mxu0  ;;  %v1336_v29 = vpop.f32.mrf.mxu1 }
 0x26a   :  { %1398 = vst [vmem:[%s2360_s9] sm:$0xff] %v1390_v26 }
 0x26b   :  { %1399 = vst [vmem:[%s2360_s9 + $0x8] sm:$0xff] %v1391_v27 }
 0x26d   :  { %v1297_v30 = vpop.f32.mrf.mxu2  ;;  %v1310_v31 = vpop.f32.mrf.mxu3 }
 0x270   :  { %v1373_v34 = vpop.f32.mrf.mxu0  ;;  %v1386_v35 = vpop.f32.mrf.mxu1 }
 0x271   :  { %v1374_v36 = vadd.f32 %v1373_v34, %v956_v32  ;;  %v1387_v37 = vadd.f32 %v1386_v35, %v957_v33 }
 0x273   :  { %v1396_v40 = vmax.f32 %v1374_v36, 0.0  ;;  %v1397_v41 = vmax.f32 %v1387_v37, 0.0 }
 0x275   :  { %1404 = vst [vmem:[%s2360_s9 + $0x30] sm:$0xff] %v1396_v40  ;;  %v1347_v42 = vpop.f32.mrf.mxu2  ;;  %v1360_v43 = vpop.f32.mrf.mxu3 }
 0x276   :  { %1405 = vst [vmem:[%s2360_s9 + $0x38] sm:$0xff] %v1397_v41  ;;  %v1348_v44 = vadd.f32 %v1347_v42, %v954_v38  ;;  %v1361_v45 = vadd.f32 %v1360_v43, %v955_v39 }
 0x278   :  { %v1394_v46 = vmax.f32 %v1348_v44, 0.0  ;;  %v1395_v47 = vmax.f32 %v1361_v45, 0.0  ;;  %v1375_v48 = vpop.f32.mrf.mxu0  ;;  %v1388_v49 = vpop.f32.mrf.mxu1 }
 0x27a   :  { %1402 = vst [vmem:[%s2360_s9 + $0x20] sm:$0xff] %v1394_v46 }
 0x27b   :  { %1403 = vst [vmem:[%s2360_s9 + $0x28] sm:$0xff] %v1395_v47 }
 0x27d   :  { %v1349_v50 = vpop.f32.mrf.mxu2  ;;  %v1362_v51 = vpop.f32.mrf.mxu3 }
 0x27e   :  { %1410 = vsyncpa [#allocation3], 1 }
 0x27f   :  { %1411 = vsyncpa [#allocation5], 1 }

// kernel: autoencoder_forward.1
= control target key start
LH: loop header
LB: loop body
LE: loop exit
PB: predicated region body
PF: predicated region fallthrough
CT: control target
= control target key end

     0   :  { %14 = vsyncpa [#allocation3], 0  ;;  %s2351_s0 = inlined_call_operand.vmem [shape: bf16[8,1024], index: 0, kind: input, shape index: {}]   ;;  %s2352_s1 = inlined_call_operand.hbm [shape: bf16[1024,128], index: 1, kind: input, shape index: {}]   ;;  %s2353_s2 = inlined_call_operand.vmem [shape: f32[1,128], index: 2, kind: input, shape index: {}]   ;;  %s2354_s3 = inlined_call_operand.vmem [shape: bf16[128,128], index: 3, kind: input, shape index: {}]   ;;  %s2355_s4 = inlined_call_operand.vmem [shape: f32[1,128], index: 4, kind: input, shape index: {}]   ;;  %s2356_s5 = inlined_call_operand.vmem [shape: bf16[128,128], index: 5, kind: input, shape index: {}]   ;;  %s2357_s6 = inlined_call_operand.vmem [shape: f32[1,128], index: 6, kind: input, shape index: {}]   ;;  %s2358_s7 = inlined_call_operand.hbm [shape: bf16[128,1024], index: 7, kind: input, shape index: {}]   ;;  %s2359_s8 = inlined_call_operand.vmem [shape: f32[1,1024], index: 8, kind: input, shape index: {}]   ;;  %s2360_s9 = inlined_call_operand.vmem [shape: f32[8,1024], index: 9, kind: output, shape index: {}]  }
   0x1   :  { %s22_s11 = sshll.u32 %s2352_s1, 4  ;;  %s23_s11 = int_to_ptr.hbm [resolvable:$true] %s22_s11 }
   0x2   :  { %15 = vsyncpa [#allocation5], 0  ;;  %s2193_s12 = smov [#allocation2]   ;;  %s45_s16 = sshll.u32 %s2358_s7, 4  ;;  %s46_s16 = int_to_ptr.hbm [resolvable:$true] %s45_s16 }
   0x3   :  { %s24_s13 = sshll.u32 %s2193_s12, 4  ;;  %s2194_s17 = smov 64   ;;  %s25_s13 = int_to_ptr.vmem [resolvable:$true] %s24_s13 }
   0x4   :  { %s2195_s18 = smov 4   ;;  %s2196_s19 = smov [#allocation4]  }
   0x5   :  { %30 = dma.hbm_to_vmem [thread:$0]  %s23_s11, 8192, %s25_s13, [#allocation3], %s2194_s17, %s2194_s17, %s2195_s18  }
   0x6   :  { %s47_s20 = sshll.u32 %s2196_s19, 4  ;;  %s2197_s21 = smov 512   ;;  %s48_s20 = int_to_ptr.vmem [resolvable:$true] %s47_s20 }
   0x7   :  { %s2198_s22 = smov 32  }
   0x8   :  { %53 = dma.hbm_to_vmem [thread:$0]  %s46_s16, 8192, %s48_s20, [#allocation5], %s2197_s21, %s2197_s21, %s2198_s22  }
   0x9   :  { %2189 = dma.done.wait [#allocation3], 8192  }
   0xa   :  { %2190 = vsyncadd [#allocation3], 4294959104 }
   0xb   :  { %2191 = dma.done.wait [#allocation5], 8192  }
   0xc   :  { %2192 = vsyncadd [#allocation5], 4294959104  ;;  %v1995_v0 = vld [vmem:[#allocation2 + $0x38] sm:$0xff]  ;;  %v1994_v4 = vld [vmem:[#allocation2 + $0x30] sm:$0xff] }
   0xd   :  { %v2003_v1 = vld [vmem:[#allocation2 + $0x78] sm:$0xff]  ;;  %612 = vmatpush.bf16.msra.mxu0 %v1995_v0  ;;  %v2002_v5 = vld [vmem:[#allocation2 + $0x70] sm:$0xff]  ;;  %v1993_v8 = vld [vmem:[#allocation2 + $0x28] sm:$0xff] }
   0xe   :  { %v2011_v2 = vld [vmem:[#allocation2 + $0xb8] sm:$0xff]  ;;  %625 = vmatpush.bf16.msra.mxu1 %v2003_v1  ;;  %v2010_v6 = vld [vmem:[#allocation2 + $0xb0] sm:$0xff]  ;;  %v2001_v9 = vld [vmem:[#allocation2 + $0x68] sm:$0xff] }
   0xf   :  { %v2019_v3 = vld [vmem:[#allocation2 + $0xf8] sm:$0xff]  ;;  %638 = vmatpush.bf16.msra.mxu2 %v2011_v2  ;;  %v2018_v7 = vld [vmem:[#allocation2 + $0xf0] sm:$0xff]  ;;  %v2009_v10 = vld [vmem:[#allocation2 + $0xa8] sm:$0xff] }
  0x10   :  { %651 = vmatpush.bf16.msra.mxu3 %v2019_v3  ;;  %v2017_v11 = vld [vmem:[#allocation2 + $0xe8] sm:$0xff]  ;;  %v1992_v12 = vld [vmem:[#allocation2 + $0x20] sm:$0xff]  ;;  %v1991_v16 = vld [vmem:[#allocation2 + $0x18] sm:$0xff] }
  0x11   :  { %613 = vmatpush.bf16.msra.mxu0 %v1994_v4  ;;  %v2000_v13 = vld [vmem:[#allocation2 + $0x60] sm:$0xff]  ;;  %v1999_v17 = vld [vmem:[#allocation2 + $0x58] sm:$0xff]  ;;  %v1990_v20 = vld [vmem:[#allocation2 + $0x10] sm:$0xff] }
  0x12   :  { %626 = vmatpush.bf16.msra.mxu1 %v2002_v5  ;;  %v2008_v14 = vld [vmem:[#allocation2 + $0xa0] sm:$0xff]  ;;  %v2007_v18 = vld [vmem:[#allocation2 + $0x98] sm:$0xff]  ;;  %v1998_v21 = vld [vmem:[#allocation2 + $0x50] sm:$0xff] }
  0x13   :  { %639 = vmatpush.bf16.msra.mxu2 %v2010_v6  ;;  %v2016_v15 = vld [vmem:[#allocation2 + $0xe0] sm:$0xff]  ;;  %v2015_v19 = vld [vmem:[#allocation2 + $0xd8] sm:$0xff]  ;;  %v2006_v22 = vld [vmem:[#allocation2 + $0x90] sm:$0xff] }
  0x14   :  { %652 = vmatpush.bf16.msra.mxu3 %v2018_v7  ;;  %v2014_v23 = vld [vmem:[#allocation2 + $0xd0] sm:$0xff]  ;;  %v1989_v24 = vld [vmem:[#allocation2 + $0x8] sm:$0xff]  ;;  %v64_v29 = vld [vmem:[%s2351_s0] sm:$0xff] }
  0x15   :  { %614 = vmatpush.bf16.msra.mxu0 %v1993_v8  ;;  %v1997_v25 = vld [vmem:[#allocation2 + $0x48] sm:$0xff]  ;;  %v1988_v30 = vld [vmem:[#allocation2] sm:$0xff]  ;;  %v204_v33 = vunpack.c.l.b16 %v64_v29  ;;  %v205_v37 = vunpack.c.h.b16 %v64_v29  ;;  %v2027_v38 = vld [vmem:[#allocation2 + $0x138] sm:$0xff] }
  0x16   :  { %627 = vmatpush.bf16.msra.mxu1 %v2001_v9  ;;  %v2005_v26 = vld [vmem:[#allocation2 + $0x88] sm:$0xff]  ;;  %v1996_v31 = vld [vmem:[#allocation2 + $0x40] sm:$0xff]  ;;  %v2035_v39 = vld [vmem:[#allocation2 + $0x178] sm:$0xff] }
  0x17   :  { %640 = vmatpush.bf16.msra.mxu2 %v2009_v10  ;;  %v2013_v27 = vld [vmem:[#allocation2 + $0xc8] sm:$0xff]  ;;  %v2004_v34 = vld [vmem:[#allocation2 + $0x80] sm:$0xff]  ;;  %v2043_v40 = vld [vmem:[#allocation2 + $0x1b8] sm:$0xff]  ;;  %v212_v43 = vpack.c.b16 %v204_v33, %v204_v33  ;;  %v213_v45 = vpack.c.b16 %v205_v37, %v205_v37 }
  0x18   :  { %653 = vmatpush.bf16.msra.mxu3 %v2017_v11  ;;  %v65_v28 = vld [vmem:[%s2351_s0 + $0x8] sm:$0xff]  ;;  %v2012_v35 = vld [vmem:[#allocation2 + $0xc0] sm:$0xff]  ;;  %v2051_v41 = vld [vmem:[#allocation2 + $0x1f8] sm:$0xff] }
  0x19   :  { %615 = vmatpush.bf16.msra.mxu0 %v1992_v12  ;;  %v206_v32 = vunpack.c.l.b16 %v65_v28  ;;  %v207_v36 = vunpack.c.h.b16 %v65_v28  ;;  %v2026_v46 = vld [vmem:[#allocation2 + $0x130] sm:$0xff]  ;;  %v2025_v50 = vld [vmem:[#allocation2 + $0x128] sm:$0xff]  ;;  %v2024_v54 = vld [vmem:[#allocation2 + $0x120] sm:$0xff] }
  0x1a   :  { %628 = vmatpush.bf16.msra.mxu1 %v2000_v13  ;;  %v2034_v47 = vld [vmem:[#allocation2 + $0x170] sm:$0xff]  ;;  %v2033_v51 = vld [vmem:[#allocation2 + $0x168] sm:$0xff]  ;;  %v2032_v55 = vld [vmem:[#allocation2 + $0x160] sm:$0xff] }
  0x1b   :  { %641 = vmatpush.bf16.msra.mxu2 %v2008_v14  ;;  %v214_v42 = vpack.c.b16 %v206_v32, %v206_v32  ;;  %v215_v44 = vpack.c.b16 %v207_v36, %v207_v36  ;;  %v2042_v48 = vld [vmem:[#allocation2 + $0x1b0] sm:$0xff]  ;;  %v2041_v52 = vld [vmem:[#allocation2 + $0x1a8] sm:$0xff]  ;;  %v2040_v56 = vld [vmem:[#allocation2 + $0x1a0] sm:$0xff] }
  0x1c   :  { %654 = vmatpush.bf16.msra.mxu3 %v2016_v15  ;;  %v2050_v49 = vld [vmem:[#allocation2 + $0x1f0] sm:$0xff]  ;;  %v2049_v53 = vld [vmem:[#allocation2 + $0x1e8] sm:$0xff]  ;;  %v2048_v57 = vld [vmem:[#allocation2 + $0x1e0] sm:$0xff] }
  0x1d   :  { %616 = vmatpush.bf16.msra.mxu0 %v1991_v16  ;;  %v2023_v58 = vld [vmem:[#allocation2 + $0x118] sm:$0xff]  ;;  %v2022_v62 = vld [vmem:[#allocation2 + $0x110] sm:$0xff]  ;;  %v2021_v2 = vld [vmem:[#allocation2 + $0x108] sm:$0xff] }
  0x1e   :  { %629 = vmatpush.bf16.msra.mxu1 %v1999_v17  ;;  %v2031_v59 = vld [vmem:[#allocation2 + $0x158] sm:$0xff]  ;;  %v2030_v63 = vld [vmem:[#allocation2 + $0x150] sm:$0xff]  ;;  %v2029_v3 = vld [vmem:[#allocation2 + $0x148] sm:$0xff] }
  0x1f   :  { %642 = vmatpush.bf16.msra.mxu2 %v2007_v18  ;;  %v2039_v60 = vld [vmem:[#allocation2 + $0x198] sm:$0xff]  ;;  %v2038_v0 = vld [vmem:[#allocation2 + $0x190] sm:$0xff]  ;;  %v2037_v5 = vld [vmem:[#allocation2 + $0x188] sm:$0xff] }
  0x20   :  { %655 = vmatpush.bf16.msra.mxu3 %v2015_v19  ;;  %v2047_v61 = vld [vmem:[#allocation2 + $0x1d8] sm:$0xff]  ;;  %v2046_v1 = vld [vmem:[#allocation2 + $0x1d0] sm:$0xff]  ;;  %v2045_v6 = vld [vmem:[#allocation2 + $0x1c8] sm:$0xff] }
  0x21   :  { %617 = vmatpush.bf16.msra.mxu0 %v1990_v20  ;;  %v66_v4 = vld [vmem:[%s2351_s0 + $0x10] sm:$0xff]  ;;  %v67_v7 = vld [vmem:[%s2351_s0 + $0x18] sm:$0xff]  ;;  %v2020_v10 = vld [vmem:[#allocation2 + $0x100] sm:$0xff] }
  0x22   :  { %630 = vmatpush.bf16.msra.mxu1 %v1998_v21  ;;  %v208_v8 = vunpack.c.l.b16 %v66_v4  ;;  %v209_v9 = vunpack.c.h.b16 %v66_v4  ;;  %v2028_v11 = vld [vmem:[#allocation2 + $0x140] sm:$0xff]  ;;  %v210_v12 = vunpack.c.l.b16 %v67_v7  ;;  %v211_v13 = vunpack.c.h.b16 %v67_v7  ;;  %v2059_v20 = vld [vmem:[%s2354_s3 + $0x38] sm:$0xff]  ;;  %v2058_v21 = vld [vmem:[%s2354_s3 + $0x30] sm:$0xff] }
  0x23   :  { %643 = vmatpush.bf16.msra.mxu2 %v2006_v22  ;;  %v2036_v14 = vld [vmem:[#allocation2 + $0x180] sm:$0xff]  ;;  %v2057_v22 = vld [vmem:[%s2354_s3 + $0x28] sm:$0xff] }
  0x24   :  { %656 = vmatpush.bf16.msra.mxu3 %v2014_v23  ;;  %v2044_v15 = vld [vmem:[#allocation2 + $0x1c0] sm:$0xff]  ;;  %v216_v16 = vpack.c.b16 %v208_v8, %v208_v8  ;;  %v217_v17 = vpack.c.b16 %v209_v9, %v209_v9  ;;  %v218_v18 = vpack.c.b16 %v210_v12, %v210_v12  ;;  %v219_v19 = vpack.c.b16 %v211_v13, %v211_v13  ;;  %v2053_v28 = vld [vmem:[%s2354_s3 + $0x8] sm:$0xff] }
  0x25   :  { %618 = vmatpush.bf16.msra.mxu0 %v1989_v24  ;;  %v2056_v23 = vld [vmem:[%s2354_s3 + $0x20] sm:$0xff]  ;;  %v2055_v24 = vld [vmem:[%s2354_s3 + $0x18] sm:$0xff]  ;;  %v1966_v4 = vld [vmem:[#allocation4 + $0x1c8] sm:$0xf] }
  0x26   :  { %631 = vmatpush.bf16.msra.mxu1 %v1997_v25  ;;  %v2052_v32 = vld [vmem:[%s2354_s3] sm:$0xff]  ;;  %v2125_v8 = vld [vmem:[#allocation4 + $0x1cc] sm:$0xf] }
  0x27   :  { %644 = vmatpush.bf16.msra.mxu2 %v2005_v26  ;;  %v2054_v26 = vld [vmem:[%s2354_s3 + $0x10] sm:$0xff]  ;;  %v1968_v9 = vld [vmem:[#allocation4 + $0x1e8] sm:$0xf0]  ;;  %v2120_v12 = vld [vmem:[#allocation4 + $0x19c] sm:$0xf0] }
  0x28   :  { %657 = vmatpush.bf16.msra.mxu3 %v2013_v27  ;;  %v2116_v13 = vld [vmem:[#allocation4 + $0x184] sm:$0xf] }
  0x29   :  { %619 = vmatpush.bf16.msra.mxu0 %v1988_v30 }
  0x2a   :  { %632 = vmatpush.bf16.msra.mxu1 %v1996_v31 }
  0x2b   :  { %645 = vmatpush.bf16.msra.mxu2 %v2004_v34  ;;  %v2138_v34 = vld [vmem:[%s2353_s2] ss:$0 sm:$0xff] }
  0x2c   :  { %658 = vmatpush.bf16.msra.mxu3 %v2012_v35  ;;  %620 = vmatmul.bf16.vlgmr.msra.gmra.mxu0 %v212_v43  ;;  %v2067_v35 = vld [vmem:[%s2356_s5 + $0x38] sm:$0xff] }
  0x2d   :  { %664 = vmatpush.bf16.msrb.mxu0 %v2027_v38  ;;  %633 = vmatmul.bf16.vlgmr.msra.gmra.mxu1 %v213_v45  ;;  %v2066_v38 = vld [vmem:[%s2356_s5 + $0x30] sm:$0xff] }
  0x2e   :  { %677 = vmatpush.bf16.msrb.mxu1 %v2035_v39  ;;  %646 = vmatmul.bf16.vlgmr.msra.gmra.mxu2 %v214_v42  ;;  %v2064_v42 = vld [vmem:[%s2356_s5 + $0x20] sm:$0xff] }
  0x2f   :  { %690 = vmatpush.bf16.msrb.mxu2 %v2043_v40  ;;  %659 = vmatmul.bf16.vlgmr.msra.gmra.mxu3 %v215_v44  ;;  %v2065_v40 = vld [vmem:[%s2356_s5 + $0x28] sm:$0xff]  ;;  %v2063_v44 = vld [vmem:[%s2356_s5 + $0x18] sm:$0xff] }
  0x30   :  { %703 = vmatpush.bf16.msrb.mxu3 %v2051_v41 }
  0x31   :  { %665 = vmatpush.bf16.msrb.mxu0 %v2026_v46 }
  0x32   :  { %678 = vmatpush.bf16.msrb.mxu1 %v2034_v47 }
  0x33   :  { %691 = vmatpush.bf16.msrb.mxu2 %v2042_v48 }
  0x34   :  { %704 = vmatpush.bf16.msrb.mxu3 %v2050_v49  ;;  %v2062_v49 = vld [vmem:[%s2356_s5 + $0x10] sm:$0xff] }
  0x35   :  { %666 = vmatpush.bf16.msrb.mxu0 %v2025_v50 }
  0x36   :  { %679 = vmatpush.bf16.msrb.mxu1 %v2033_v51 }
  0x37   :  { %692 = vmatpush.bf16.msrb.mxu2 %v2041_v52 }
  0x38   :  { %705 = vmatpush.bf16.msrb.mxu3 %v2049_v53 }
  0x39   :  { %667 = vmatpush.bf16.msrb.mxu0 %v2024_v54 }
  0x3a   :  { %680 = vmatpush.bf16.msrb.mxu1 %v2032_v55 }
  0x3b   :  { %693 = vmatpush.bf16.msrb.mxu2 %v2040_v56 }
  0x3c   :  { %706 = vmatpush.bf16.msrb.mxu3 %v2048_v57 }
  0x3d   :  { %668 = vmatpush.bf16.msrb.mxu0 %v2023_v58 }
  0x3e   :  { %681 = vmatpush.bf16.msrb.mxu1 %v2031_v59 }
  0x3f   :  { %694 = vmatpush.bf16.msrb.mxu2 %v2039_v60 }
  0x40   :  { %707 = vmatpush.bf16.msrb.mxu3 %v2047_v61  ;;  %v2061_v61 = vld [vmem:[%s2356_s5 + $0x8] sm:$0xff] }
  0x41   :  { %669 = vmatpush.bf16.msrb.mxu0 %v2022_v62  ;;  %v2060_v62 = vld [vmem:[%s2356_s5] sm:$0xff] }
  0x42   :  { %682 = vmatpush.bf16.msrb.mxu1 %v2030_v63  ;;  %v1958_v63 = vld [vmem:[#allocation4 + $0x1c0] sm:$0xf] }
  0x43   :  { %695 = vmatpush.bf16.msrb.mxu2 %v2038_v0  ;;  %v2128_v0 = vld [vmem:[#allocation4 + $0x1dc] sm:$0xf0] }
  0x44   :  { %708 = vmatpush.bf16.msrb.mxu3 %v2046_v1  ;;  %v2124_v1 = vld [vmem:[#allocation4 + $0x1c4] sm:$0xf] }
  0x45   :  { %670 = vmatpush.bf16.msrb.mxu0 %v2021_v2  ;;  %v1959_v2 = vor.u32 %v2128_v0, %v1958_v63  ;;  %v1806_v63 = vld [vmem:[#allocation4 + $0x88] sm:$0xf] }
  0x46   :  { %683 = vmatpush.bf16.msrb.mxu1 %v2029_v3  ;;  %v1960_v3 = vld [vmem:[#allocation4 + $0x1e0] sm:$0xf0]  ;;  %v2089_v0 = vld [vmem:[#allocation4 + $0xa4] sm:$0xf0] }
  0x47   :  { %696 = vmatpush.bf16.msrb.mxu2 %v2037_v5  ;;  %v2129_v5 = vld [vmem:[#allocation4 + $0x1e4] sm:$0xf0] }
  0x48   :  { %709 = vmatpush.bf16.msrb.mxu3 %v2045_v6  ;;  %v1963_v6 = vor.u32 %v2124_v1, %v1960_v3  ;;  %v1967_v7 = vor.u32 %v2129_v5, %v1966_v4  ;;  %v2085_v1 = vld [vmem:[#allocation4 + $0x8c] sm:$0xf]  ;;  %v2139_v3 = vld [vmem:[%s2355_s4] ss:$0 sm:$0xff] }
  0x49   :  { %671 = vmatpush.bf16.msrb.mxu0 %v2020_v10  ;;  %v1926_v10 = vld [vmem:[#allocation4 + $0x180] sm:$0xf] }
  0x4a   :  { %684 = vmatpush.bf16.msrb.mxu1 %v2028_v11  ;;  %v1971_v11 = vor.u32 %v2125_v8, %v1968_v9  ;;  %v2080_v8 = vld [vmem:[#allocation4 + $0x5c] sm:$0xf0]  ;;  %v2076_v9 = vld [vmem:[#allocation4 + $0x44] sm:$0xf] }
  0x4b   :  { %697 = vmatpush.bf16.msrb.mxu2 %v2036_v14  ;;  %v1928_v14 = vld [vmem:[#allocation4 + $0x1a0] sm:$0xf0] }
  0x4c   :  { %710 = vmatpush.bf16.msrb.mxu3 %v2044_v15  ;;  %672 = vmatmul.bf16.vlgmr.msrb.gmra.mxu0 %v216_v16  ;;  %v1927_v15 = vor.u32 %v2120_v12, %v1926_v10  ;;  %v1931_v16 = vor.u32 %v2116_v13, %v1928_v14  ;;  %v1774_v12 = vld [vmem:[#allocation4 + $0x48] sm:$0xf]  ;;  %v2077_v14 = vld [vmem:[#allocation4 + $0x4c] sm:$0xf] }
  0x4d   :  { %685 = vmatmul.bf16.vlgmr.msrb.gmra.mxu1 %v217_v17  ;;  %786 = vmatpush.bf16.msra.mxu0 %v2059_v20  ;;  %v1934_v17 = vld [vmem:[#allocation4 + $0x188] sm:$0xf] }
  0x4e   :  { %698 = vmatmul.bf16.vlgmr.msrb.gmra.mxu2 %v218_v18  ;;  %869 = vmatpush.bf16.msra.mxu1 %v2067_v35  ;;  %v2121_v18 = vld [vmem:[#allocation4 + $0x1a4] sm:$0xf0]  ;;  %v2104_v35 = vld [vmem:[#allocation4 + $0x11c] sm:$0xf0] }
  0x4f   :  { %711 = vmatmul.bf16.vlgmr.msrb.gmra.mxu3 %v219_v19  ;;  %1286 = vmatpush.bf16.msra.mxu2 %v1959_v2  ;;  %v2117_v19 = vld [vmem:[#allocation4 + $0x18c] sm:$0xf]  ;;  %v1935_v20 = vor.u32 %v2121_v18, %v1934_v17  ;;  %v2081_v13 = vld [vmem:[#allocation4 + $0x64] sm:$0xf0]  ;;  %v1734_v17 = vld [vmem:[#allocation4] sm:$0xf] }
  0x50   :  { %1299 = vmatpush.bf16.msra.mxu3 %v1963_v6  ;;  %v1808_v2 = vld [vmem:[#allocation4 + $0xa8] sm:$0xf0]  ;;  %v1807_v6 = vor.u32 %v2089_v0, %v1806_v63  ;;  %v2072_v18 = vld [vmem:[#allocation4 + $0x1c] sm:$0xf0]  ;;  %v2110_v63 = vld [vmem:[#allocation4 + $0x154] sm:$0xf] }
  0x51   :  { %787 = vmatpush.bf16.msra.mxu0 %v2058_v21  ;;  %v1936_v21 = vld [vmem:[#allocation4 + $0x1a8] sm:$0xf0]  ;;  %v1811_v10 = vor.u32 %v2085_v1, %v1808_v2  ;;  %v1912_v1 = vld [vmem:[#allocation4 + $0x170] sm:$0xf0]  ;;  %v1918_v2 = vld [vmem:[#allocation4 + $0x158] sm:$0xf] }
  0x52   :  { %870 = vmatpush.bf16.msra.mxu1 %v2066_v38  ;;  %v1864_v38 = vld [vmem:[#allocation4 + $0x120] sm:$0xf0] }
  0x53   :  { %1287 = vmatpush.bf16.msra.mxu2 %v1927_v15  ;;  %v1776_v15 = vld [vmem:[#allocation4 + $0x68] sm:$0xf0] }
  0x54   :  { %1300 = vmatpush.bf16.msra.mxu3 %v1931_v16 }
  0x55   :  { %788 = vmatpush.bf16.msra.mxu0 %v2057_v22  ;;  %v1894_v22 = vld [vmem:[#allocation4 + $0x140] sm:$0xf] }
  0x56   :  { %871 = vmatpush.bf16.msra.mxu1 %v2065_v40  ;;  %v2105_v40 = vld [vmem:[#allocation4 + $0x124] sm:$0xf0] }
  0x59   :  { %789 = vmatpush.bf16.msra.mxu0 %v2056_v23  ;;  %v2112_v23 = vld [vmem:[#allocation4 + $0x15c] sm:$0xf0] }
  0x5a   :  { %872 = vmatpush.bf16.msra.mxu1 %v2064_v42  ;;  %v1872_v42 = vld [vmem:[#allocation4 + $0x128] sm:$0xf0] }
  0x5d   :  { %790 = vmatpush.bf16.msra.mxu0 %v2055_v24  ;;  %v1939_v24 = vor.u32 %v2117_v19, %v1936_v21  ;;  %v2068_v19 = vld [vmem:[#allocation4 + $0x4] sm:$0xf] }
  0x5e   :  { %873 = vmatpush.bf16.msra.mxu1 %v2063_v44 }
  0x61   :  { %791 = vmatpush.bf16.msra.mxu0 %v2054_v26  ;;  %v1896_v26 = vld [vmem:[#allocation4 + $0x160] sm:$0xf0] }
  0x62   :  { %874 = vmatpush.bf16.msra.mxu1 %v2062_v49 }
  0x65   :  { %792 = vmatpush.bf16.msra.mxu0 %v2053_v28  ;;  %v1895_v28 = vor.u32 %v2112_v23, %v1894_v22  ;;  %v1775_v22 = vor.u32 %v2081_v13, %v1774_v12  ;;  %v1736_v23 = vld [vmem:[#allocation4 + $0x20] sm:$0xf0]  ;;  %v1880_v13 = vld [vmem:[#allocation4 + $0x130] sm:$0xf0] }
  0x66   :  { %875 = vmatpush.bf16.msra.mxu1 %v2061_v61 }
  0x67   :  { %1288 = vmatpush.bf16.msra.mxu2 %v1895_v28  ;;  %v2069_v28 = vld [vmem:[#allocation4 + $0xc] sm:$0xf] }
  0x69   :  { %793 = vmatpush.bf16.msra.mxu0 %v2052_v32 }
  0x6a   :  { %876 = vmatpush.bf16.msra.mxu1 %v2060_v62  ;;  %v1800_v62 = vld [vmem:[#allocation4 + $0xa0] sm:$0xf0] }
  0x6d   :  { %1312 = vmatpush.bf16.msrb.mxu0 %v1967_v7  ;;  %v1766_v7 = vld [vmem:[#allocation4 + $0x40] sm:$0xf] }
  0x6e   :  { %1325 = vmatpush.bf16.msrb.mxu1 %v1971_v11  ;;  %v1768_v11 = vld [vmem:[#allocation4 + $0x60] sm:$0xf0]  ;;  %v1767_v16 = vor.u32 %v2080_v8, %v1766_v7  ;;  %v1920_v7 = vld [vmem:[#allocation4 + $0x178] sm:$0xf0] }
  0x6f   :  { %v1771_v21 = vor.u32 %v2076_v9, %v1768_v11  ;;  %v1878_v9 = vld [vmem:[#allocation4 + $0x110] sm:$0xf]  ;;  %v2102_v11 = vld [vmem:[#allocation4 + $0x114] sm:$0xf] }
  0x71   :  { %1313 = vmatpush.bf16.msrb.mxu0 %v1935_v20 }
  0x72   :  { %1326 = vmatpush.bf16.msrb.mxu1 %v1939_v24  ;;  %v1742_v24 = vld [vmem:[#allocation4 + $0x8] sm:$0xf] }
  0xa9   :  { %v621_v25 = vpop.f32.mrf.mxu0 }
  0xaa   :  { %v634_v27 = vpop.f32.mrf.mxu1  ;;  %v622_v39 = vadd.f32 %v2138_v34, %v621_v25  ;;  %v2108_v25 = vld [vmem:[#allocation4 + $0x144] sm:$0xf]  ;;  %v1862_v34 = vld [vmem:[#allocation4 + $0x100] sm:$0xf] }
  0xab   :  { %v1899_v32 = vor.u32 %v2108_v25, %v1896_v26  ;;  %v2073_v25 = vld [vmem:[#allocation4 + $0x24] sm:$0xf0] }
  0xac   :  { %v635_v41 = vadd.f32 %v634_v27, %v622_v39  ;;  %v1902_v27 = vld [vmem:[#allocation4 + $0x148] sm:$0xf] }
  0xad   :  { %v1870_v39 = vld [vmem:[#allocation4 + $0x108] sm:$0xf]  ;;  %1301 = vmatpush.bf16.msra.mxu3 %v1899_v32  ;;  %v2126_v32 = vld [vmem:[#allocation4 + $0x1d4] sm:$0xf] }
  0xb1   :  { %v647_v29 = vpop.f32.mrf.mxu2  ;;  %v623_v31 = vpop.f32.mrf.mxu0 }
  0xb2   :  { %v660_v30 = vpop.f32.mrf.mxu3  ;;  %v636_v33 = vpop.f32.mrf.mxu1  ;;  %v648_v43 = vadd.f32 %v647_v29, %v635_v41  ;;  %v2113_v29 = vld [vmem:[#allocation4 + $0x164] sm:$0xf0]  ;;  %v1904_v31 = vld [vmem:[#allocation4 + $0x168] sm:$0xf0] }
  0xb3   :  { %v1903_v33 = vor.u32 %v2113_v29, %v1902_v27  ;;  %v2101_v41 = vld [vmem:[#allocation4 + $0x10c] sm:$0xf]  ;;  %v1779_v27 = vor.u32 %v2077_v14, %v1776_v15  ;;  %v1886_v14 = vld [vmem:[#allocation4 + $0x118] sm:$0xf] }
  0xb4   :  { %v661_v45 = vadd.f32 %v660_v30, %v648_v43  ;;  %v2109_v30 = vld [vmem:[#allocation4 + $0x14c] sm:$0xf]  ;;  %v1863_v43 = vor.u32 %v2104_v35, %v1862_v34  ;;  %v1875_v49 = vor.u32 %v2101_v41, %v1872_v42  ;;  %v1735_v35 = vor.u32 %v2072_v18, %v1734_v17  ;;  %v1984_v41 = vld [vmem:[#allocation4 + $0x1f8] sm:$0xf0]  ;;  %v2107_v15 = vld [vmem:[#allocation4 + $0x134] sm:$0xf0] }
  0xb5   :  { %1314 = vmatpush.bf16.msrb.mxu0 %v1903_v33  ;;  %v1744_v29 = vld [vmem:[#allocation4 + $0x28] sm:$0xf0]  ;;  %v1976_v33 = vld [vmem:[#allocation4 + $0x1f0] sm:$0xf0]  ;;  %v1887_v17 = vor.u32 %v2107_v15, %v1886_v14  ;;  %v2103_v18 = vld [vmem:[#allocation4 + $0x11c] sm:$0xf] }
  0xb6   :  { %1289 = vmatpush.bf16.msra.mxu2 %v1863_v43  ;;  %v1747_v43 = vor.u32 %v2069_v28, %v1744_v29 }
  0xb9   :  { %v649_v36 = vpop.f32.mrf.mxu2 }
  0xba   :  { %v662_v37 = vpop.f32.mrf.mxu3  ;;  %v2100_v36 = vld [vmem:[#allocation4 + $0x104] sm:$0xf] }
  0xbb   :  { %v1907_v37 = vor.u32 %v2109_v30, %v1904_v31  ;;  %v1867_v44 = vor.u32 %v2100_v36, %v1864_v38  ;;  %v1974_v30 = vld [vmem:[#allocation4 + $0x1d0] sm:$0xf]  ;;  %v1982_v36 = vld [vmem:[#allocation4 + $0x1d8] sm:$0xf]  ;;  %v1739_v38 = vor.u32 %v2068_v19, %v1736_v23  ;;  %v1888_v19 = vld [vmem:[#allocation4 + $0x138] sm:$0xf0] }
  0xbc   :  { %v2130_v31 = vld [vmem:[#allocation4 + $0x1ec] sm:$0xf0]  ;;  %v2094_v23 = vld [vmem:[#allocation4 + $0xd4] sm:$0xf] }
  0xbd   :  { %1327 = vmatpush.bf16.msrb.mxu1 %v1907_v37  ;;  %1302 = vmatpush.bf16.msra.mxu3 %v1867_v44  ;;  %v2131_v37 = vld [vmem:[#allocation4 + $0x1f4] sm:$0xf0]  ;;  %v1975_v44 = vor.u32 %v2130_v31, %v1974_v30  ;;  %v2095_v30 = vld [vmem:[#allocation4 + $0xdc] sm:$0xf] }
  0xbe   :  { %v1856_v31 = vld [vmem:[#allocation4 + $0xf8] sm:$0xf0] }
  0xc1   :  { %1328 = vmatpush.bf16.msrb.mxu1 %v1875_v49  ;;  %v2118_v49 = vld [vmem:[#allocation4 + $0x194] sm:$0xf] }
  0xc9   :  { %v673_v46 = vpop.f32.mrf.mxu0 }
  0xca   :  { %v686_v47 = vpop.f32.mrf.mxu1  ;;  %v674_v48 = vadd.f32 %v673_v46, %v661_v45  ;;  %v1871_v45 = vor.u32 %v2105_v40, %v1870_v39  ;;  %v1830_v46 = vld [vmem:[#allocation4 + $0xc0] sm:$0xf]  ;;  %v1743_v39 = vor.u32 %v2073_v25, %v1742_v24  ;;  %v2127_v40 = vld [vmem:[#allocation4 + $0x1dc] sm:$0xf]  ;;  %v1848_v25 = vld [vmem:[#allocation4 + $0xf0] sm:$0xf0] }
  0xcb   :  { %v1851_v28 = vor.u32 %v2094_v23, %v1848_v25 }
  0xcc   :  { %v687_v50 = vadd.f32 %v686_v47, %v674_v48  ;;  %v2096_v47 = vld [vmem:[#allocation4 + $0xdc] sm:$0xf0]  ;;  %v2092_v48 = vld [vmem:[#allocation4 + $0xc4] sm:$0xf]  ;;  %1315 = vmatpush.bf16.msrb.mxu0 %v1871_v45  ;;  %v1979_v45 = vor.u32 %v2126_v32, %v1976_v33  ;;  %v1814_v32 = vld [vmem:[#allocation4 + $0x90] sm:$0xf]  ;;  %v1859_v33 = vor.u32 %v2095_v30, %v1856_v31 }
  0xd1   :  { %v699_v51 = vpop.f32.mrf.mxu2  ;;  %v675_v54 = vpop.f32.mrf.mxu0 }
  0xd2   :  { %v712_v52 = vpop.f32.mrf.mxu3  ;;  %v700_v53 = vadd.f32 %v699_v51, %v687_v50  ;;  %v688_v55 = vpop.f32.mrf.mxu1  ;;  %v1832_v50 = vld [vmem:[#allocation4 + $0xe0] sm:$0xf0]  ;;  %v1838_v51 = vld [vmem:[#allocation4 + $0xc8] sm:$0xf]  ;;  %v1840_v54 = vld [vmem:[#allocation4 + $0xe8] sm:$0xf0] }
  0xd3   :  { %v1831_v55 = vor.u32 %v2096_v47, %v1830_v46  ;;  %v1983_v46 = vor.u32 %v2131_v37, %v1982_v36  ;;  %v1942_v47 = vld [vmem:[#allocation4 + $0x190] sm:$0xf]  ;;  %v1816_v36 = vld [vmem:[#allocation4 + $0xb0] sm:$0xf0] }
  0xd4   :  { %v713_v56 = vadd.f32 %v712_v52, %v700_v53  ;;  %v2097_v52 = vld [vmem:[#allocation4 + $0xe4] sm:$0xf0]  ;;  %v2093_v53 = vld [vmem:[#allocation4 + $0xcc] sm:$0xf] }
  0xd5   :  { %v1843_v61 = vor.u32 %v2093_v53, %v1840_v54  ;;  %1290 = vmatpush.bf16.msra.mxu2 %v1831_v55  ;;  %v2123_v53 = vld [vmem:[#allocation4 + $0x1b4] sm:$0xf0]  ;;  %v2119_v55 = vld [vmem:[#allocation4 + $0x19c] sm:$0xf] }
  0xd6   :  { %v716_v57 = vmax.f32 %v713_v56, 0.0  ;;  %v1835_v56 = vor.u32 %v2092_v48, %v1832_v50  ;;  %v2122_v48 = vld [vmem:[#allocation4 + $0x1ac] sm:$0xf0]  ;;  %v1987_v50 = vor.u32 %v2127_v40, %v1984_v41  ;;  %v2091_v40 = vld [vmem:[#allocation4 + $0xb4] sm:$0xf0] }
  0xd7   :  { %1329 = vmatpush.bf16.msrb.mxu1 %v1843_v61  ;;  %v1910_v61 = vld [vmem:[#allocation4 + $0x150] sm:$0xf]  ;;  %v2087_v41 = vld [vmem:[#allocation4 + $0x9c] sm:$0xf] }
  0xd8   :  { %v717_v58 = vpack.c.bf16 %v716_v57, %v716_v57  ;;  %v1839_v57 = vor.u32 %v2097_v52, %v1838_v51  ;;  %1303 = vmatpush.bf16.msra.mxu3 %v1835_v56  ;;  %v1944_v51 = vld [vmem:[#allocation4 + $0x1b0] sm:$0xf0]  ;;  %v1950_v52 = vld [vmem:[#allocation4 + $0x198] sm:$0xf]  ;;  %v1952_v56 = vld [vmem:[#allocation4 + $0x1b8] sm:$0xf0] }
  0xd9   :  { %v701_v59 = vpop.f32.mrf.mxu2 }
  0xda   :  { %v714_v60 = vpop.f32.mrf.mxu3  ;;  %794 = vmatmul.bf16.vlgmr.msra.gmra.mxu0 %v717_v58  ;;  %v1798_v58 = vld [vmem:[#allocation4 + $0x80] sm:$0xf] }
  0xdb   :  { %v2088_v59 = vld [vmem:[#allocation4 + $0x9c] sm:$0xf0]  ;;  %v2084_v60 = vld [vmem:[#allocation4 + $0x84] sm:$0xf]  ;;  %1316 = vmatpush.bf16.msrb.mxu0 %v1839_v57  ;;  %1330 = vmatpush.bf16.msrb.mxu1 %v1811_v10  ;;  %v1943_v57 = vor.u32 %v2122_v48, %v1942_v47  ;;  %v2106_v10 = vld [vmem:[#allocation4 + $0x12c] sm:$0xf0] }
  0xdc   :  { %v1799_v4 = vor.u32 %v2088_v59, %v1798_v58  ;;  %v1803_v5 = vor.u32 %v2084_v60, %v1800_v62  ;;  %v1947_v58 = vor.u32 %v2118_v49, %v1944_v51  ;;  %v1951_v59 = vor.u32 %v2123_v53, %v1950_v52  ;;  %v2114_v62 = vld [vmem:[#allocation4 + $0x16c] sm:$0xf0]  ;;  %v2078_v47 = vld [vmem:[#allocation4 + $0x54] sm:$0xf]  ;;  %v1790_v49 = vld [vmem:[#allocation4 + $0x58] sm:$0xf] }
  0xdd   :  { %v1955_v60 = vor.u32 %v2119_v55, %v1952_v56  ;;  %v1911_v0 = vor.u32 %v2114_v62, %v1910_v61  ;;  %v1879_v12 = vor.u32 %v2106_v10, %v1878_v9  ;;  %v1784_v48 = vld [vmem:[#allocation4 + $0x70] sm:$0xf0]  ;;  %v2083_v51 = vld [vmem:[#allocation4 + $0x74] sm:$0xf0]  ;;  %v2079_v52 = vld [vmem:[#allocation4 + $0x5c] sm:$0xf] }
  0xde   :  { %1291 = vmatpush.bf16.msra.mxu2 %v1799_v4  ;;  %1304 = vmatpush.bf16.msra.mxu3 %v1803_v5  ;;  %v1915_v4 = vor.u32 %v2110_v63, %v1912_v1  ;;  %v1792_v53 = vld [vmem:[#allocation4 + $0x78] sm:$0xf0]  ;;  %v1791_v55 = vor.u32 %v2083_v51, %v1790_v49  ;;  %v1750_v56 = vld [vmem:[#allocation4 + $0x10] sm:$0xf]  ;;  %v1758_v61 = vld [vmem:[#allocation4 + $0x18] sm:$0xf] }
  0xdf   :  { %1317 = vmatpush.bf16.msrb.mxu0 %v1807_v6  ;;  %1331 = vmatpush.bf16.msrb.mxu1 %v1779_v27  ;;  %v2111_v6 = vld [vmem:[#allocation4 + $0x15c] sm:$0xf]  ;;  %v2099_v27 = vld [vmem:[#allocation4 + $0xf4] sm:$0xf0] }
  0xe0   :  { %v1923_v8 = vor.u32 %v2111_v6, %v1920_v7  ;;  %v2075_v62 = vld [vmem:[#allocation4 + $0x34] sm:$0xf0]  ;;  %v2071_v63 = vld [vmem:[#allocation4 + $0x1c] sm:$0xf] }
  0xe2   :  { %1292 = vmatpush.bf16.msra.mxu2 %v1767_v16  ;;  %1305 = vmatpush.bf16.msra.mxu3 %v1771_v21  ;;  %v1883_v16 = vor.u32 %v2102_v11, %v1880_v13  ;;  %v1846_v21 = vld [vmem:[#allocation4 + $0xd0] sm:$0xf]  ;;  %v948_v11 = vld [vmem:[%s2359_s8] sm:$0xff] }
  0xe3   :  { %1318 = vmatpush.bf16.msrb.mxu0 %v1775_v22  ;;  %1332 = vmatpush.bf16.msrb.mxu1 %v1747_v43  ;;  %v2098_v22 = vld [vmem:[#allocation4 + $0xec] sm:$0xf0]  ;;  %v1824_v43 = vld [vmem:[#allocation4 + $0xb8] sm:$0xf0]  ;;  %v953_v13 = vperm.slane %v948_v11, 3 }
  0xe4   :  { %v1847_v24 = vor.u32 %v2098_v22, %v1846_v21 }
  0xe6   :  { %1293 = vmatpush.bf16.msra.mxu2 %v1735_v35  ;;  %1306 = vmatpush.bf16.msra.mxu3 %v1739_v38  ;;  %v2086_v35 = vld [vmem:[#allocation4 + $0x94] sm:$0xf] }
  0xe7   :  { %1319 = vmatpush.bf16.msrb.mxu0 %v1743_v39  ;;  %v1819_v38 = vor.u32 %v2086_v35, %v1816_v36  ;;  %v1822_v39 = vld [vmem:[#allocation4 + $0x98] sm:$0xf] }
  0xea   :  { %1338 = vmatpush.bf16.msrb.mxu2 %v1975_v44  ;;  %1351 = vmatpush.bf16.msrb.mxu3 %v1979_v45  ;;  %v1782_v44 = vld [vmem:[#allocation4 + $0x50] sm:$0xf] }
  0xeb   :  { %1364 = vmatpush.bf16.msra.mxu0 %v1983_v46  ;;  %v2082_v45 = vld [vmem:[#allocation4 + $0x6c] sm:$0xf0]  ;;  %v1827_v46 = vor.u32 %v2087_v41, %v1824_v43 }
  0xee   :  { %1339 = vmatpush.bf16.msrb.mxu2 %v1943_v57  ;;  %1352 = vmatpush.bf16.msrb.mxu3 %v1947_v58  ;;  %v2074_v57 = vld [vmem:[#allocation4 + $0x2c] sm:$0xf0]  ;;  %v2070_v58 = vld [vmem:[#allocation4 + $0x14] sm:$0xf] }
  0xef   :  { %1365 = vmatpush.bf16.msra.mxu0 %v1951_v59  ;;  %v1795_v59 = vor.u32 %v2079_v52, %v1792_v53  ;;  %v1751_v1 = vor.u32 %v2074_v57, %v1750_v56 }
  0xf2   :  { %1340 = vmatpush.bf16.msrb.mxu2 %v1911_v0  ;;  %1353 = vmatpush.bf16.msrb.mxu3 %v1915_v4  ;;  %v1760_v0 = vld [vmem:[#allocation4 + $0x38] sm:$0xf0] }
  0xf3   :  { %v1763_v4 = vor.u32 %v2071_v63, %v1760_v0 }
  0xf6   :  { %1341 = vmatpush.bf16.msrb.mxu2 %v1879_v12  ;;  %1354 = vmatpush.bf16.msrb.mxu3 %v1883_v16  ;;  %v952_v12 = vperm.slane %v948_v11, 2 }
  0xfa   :  { %1342 = vmatpush.bf16.msrb.mxu2 %v1847_v24  ;;  %1355 = vmatpush.bf16.msrb.mxu3 %v1851_v28 }
  0xfe   :  { %1356 = vmatpush.bf16.msrb.mxu3 %v1819_v38  ;;  %v954_v38 = vperm.slane %v948_v11, 4 }
 0x157   :  { %v795_v20 = vpop.f32.mrf.mxu0 }
 0x158   :  { %v796_v26 = vadd.f32 %v2139_v3, %v795_v20  ;;  %v2115_v3 = vld [vmem:[#allocation4 + $0x174] sm:$0xf0]  ;;  %v1891_v20 = vor.u32 %v2103_v18, %v1888_v19  ;;  %v950_v18 = vperm.slane %v948_v11, 0  ;;  %v951_v19 = vperm.slane %v948_v11, 1 }
 0x159   :  { %v1919_v5 = vor.u32 %v2115_v3, %v1918_v2  ;;  %v1759_v3 = vor.u32 %v2075_v62, %v1758_v61 }
 0x15a   :  { %v799_v34 = vmax.f32 %v796_v26, 0.0  ;;  %v1854_v26 = vld [vmem:[#allocation4 + $0xd8] sm:$0xf] }
 0x15b   :  { %1366 = vmatpush.bf16.msra.mxu0 %v1919_v5  ;;  %v1855_v29 = vor.u32 %v2099_v27, %v1854_v26  ;;  %v2140_v5 = vld [vmem:[%s2357_s6] ss:$0 sm:$0xff] }
 0x15c   :  { %v800_v42 = vpack.c.bf16 %v799_v34, %v799_v34  ;;  %v2090_v34 = vld [vmem:[#allocation4 + $0xac] sm:$0xf0] }
 0x15d   :  { %v1815_v37 = vor.u32 %v2090_v34, %v1814_v32  ;;  %v956_v32 = vperm.slane %v948_v11, 6 }
 0x15e   :  { %877 = vmatmul.bf16.vlgmr.msra.gmra.mxu1 %v800_v42  ;;  %v1823_v42 = vor.u32 %v2091_v40, %v1822_v39  ;;  %v955_v39 = vperm.slane %v948_v11, 5 }
 0x15f   :  { %v797_v54 = vpop.f32.mrf.mxu0  ;;  %1377 = vmatpush.bf16.msra.mxu1 %v1987_v50  ;;  %1367 = vmatpush.bf16.msra.mxu0 %v1887_v17  ;;  %v1783_v50 = vor.u32 %v2082_v45, %v1782_v44 }
 0x160   :  { %1343 = vmatpush.bf16.msrb.mxu2 %v1815_v37  ;;  %v1787_v54 = vor.u32 %v2078_v47, %v1784_v48 }
 0x162   :  { %1357 = vmatpush.bf16.msrb.mxu3 %v1787_v54 }
 0x163   :  { %1378 = vmatpush.bf16.msra.mxu1 %v1955_v60  ;;  %1368 = vmatpush.bf16.msra.mxu0 %v1855_v29  ;;  %v1752_v60 = vld [vmem:[#allocation4 + $0x30] sm:$0xf0] }
 0x164   :  { %1344 = vmatpush.bf16.msrb.mxu2 %v1783_v50  ;;  %v1755_v2 = vor.u32 %v2070_v58, %v1752_v60 }
 0x166   :  { %1358 = vmatpush.bf16.msrb.mxu3 %v1755_v2 }
 0x167   :  { %1379 = vmatpush.bf16.msra.mxu1 %v1923_v8  ;;  %1369 = vmatpush.bf16.msra.mxu0 %v1823_v42 }
 0x168   :  { %1345 = vmatpush.bf16.msrb.mxu2 %v1751_v1 }
 0x16b   :  { %1380 = vmatpush.bf16.msra.mxu1 %v1891_v20  ;;  %1370 = vmatpush.bf16.msra.mxu0 %v1791_v55 }
 0x16f   :  { %1381 = vmatpush.bf16.msra.mxu1 %v1859_v33  ;;  %1371 = vmatpush.bf16.msra.mxu0 %v1759_v3  ;;  %v957_v33 = vperm.slane %v948_v11, 7 }
 0x173   :  { %1382 = vmatpush.bf16.msra.mxu1 %v1827_v46 }
 0x177   :  { %1383 = vmatpush.bf16.msra.mxu1 %v1795_v59 }
 0x17b   :  { %1384 = vmatpush.bf16.msra.mxu1 %v1763_v4 }
 0x1db   :  { %v878_v6 = vpop.f32.mrf.mxu1 }
 0x1dc   :  { %v879_v7 = vadd.f32 %v2140_v5, %v878_v6 }
 0x1de   :  { %v882_v8 = vmax.f32 %v879_v7, 0.0 }
 0x1e0   :  { %v883_v9 = vpack.c.bf16 %v882_v8, %v882_v8 }
 0x1e2   :  { %1294 = vmatmul.bf16.vlgmr.msra.gmra.mxu2 %v883_v9  ;;  %1307 = vmatmul.bf16.vlgmr.msra.gmra.mxu3 %v883_v9 }
 0x1e3   :  { %1320 = vmatmul.bf16.vlgmr.msrb.gmra.mxu0 %v883_v9  ;;  %1333 = vmatmul.bf16.vlgmr.msrb.gmra.mxu1 %v883_v9  ;;  %v880_v10 = vpop.f32.mrf.mxu1 }
 0x1f2   :  { %1346 = vmatmul.bf16.vlgmr.msrb.gmra.mxu2 %v883_v9  ;;  %1359 = vmatmul.bf16.vlgmr.msrb.gmra.mxu3 %v883_v9 }
 0x1f3   :  { %1372 = vmatmul.bf16.vlgmr.msra.gmra.mxu0 %v883_v9  ;;  %1385 = vmatmul.bf16.vlgmr.msra.gmra.mxu1 %v883_v9 }
 0x260   :  { %v1321_v14 = vpop.f32.mrf.mxu0  ;;  %v1334_v15 = vpop.f32.mrf.mxu1 }
 0x261   :  { %v1322_v16 = vadd.f32 %v1321_v14, %v952_v12  ;;  %v1335_v17 = vadd.f32 %v1334_v15, %v953_v13 }
 0x263   :  { %v1392_v20 = vmax.f32 %v1322_v16, 0.0  ;;  %v1393_v21 = vmax.f32 %v1335_v17, 0.0 }
 0x265   :  { %1400 = vst [vmem:[%s2360_s9 + $0x10] sm:$0xff] %v1392_v20  ;;  %v1295_v22 = vpop.f32.mrf.mxu2  ;;  %v1308_v23 = vpop.f32.mrf.mxu3 }
 0x266   :  { %1401 = vst [vmem:[%s2360_s9 + $0x18] sm:$0xff] %v1393_v21  ;;  %v1296_v24 = vadd.f32 %v1295_v22, %v950_v18  ;;  %v1309_v25 = vadd.f32 %v1308_v23, %v951_v19 }
 0x268   :  { %v1390_v26 = vmax.f32 %v1296_v24, 0.0  ;;  %v1391_v27 = vmax.f32 %v1309_v25, 0.0  ;;  %v1323_v28 = vpop.f32.mrf.mxu0  ;;  %v1336_v29 = vpop.f32.mrf.mxu1 }
 0x26a   :  { %1398 = vst [vmem:[%s2360_s9] sm:$0xff] %v1390_v26 }
 0x26b   :  { %1399 = vst [vmem:[%s2360_s9 + $0x8] sm:$0xff] %v1391_v27 }
 0x26d   :  { %v1297_v30 = vpop.f32.mrf.mxu2  ;;  %v1310_v31 = vpop.f32.mrf.mxu3 }
 0x270   :  { %v1373_v34 = vpop.f32.mrf.mxu0  ;;  %v1386_v35 = vpop.f32.mrf.mxu1 }
 0x271   :  { %v1374_v36 = vadd.f32 %v1373_v34, %v956_v32  ;;  %v1387_v37 = vadd.f32 %v1386_v35, %v957_v33 }
 0x273   :  { %v1396_v40 = vmax.f32 %v1374_v36, 0.0  ;;  %v1397_v41 = vmax.f32 %v1387_v37, 0.0 }
 0x275   :  { %1404 = vst [vmem:[%s2360_s9 + $0x30] sm:$0xff] %v1396_v40  ;;  %v1347_v42 = vpop.f32.mrf.mxu2  ;;  %v1360_v43 = vpop.f32.mrf.mxu3 }
 0x276   :  { %1405 = vst [vmem:[%s2360_s9 + $0x38] sm:$0xff] %v1397_v41  ;;  %v1348_v44 = vadd.f32 %v1347_v42, %v954_v38  ;;  %v1361_v45 = vadd.f32 %v1360_v43, %v955_v39 }
 0x278   :  { %v1394_v46 = vmax.f32 %v1348_v44, 0.0  ;;  %v1395_v47 = vmax.f32 %v1361_v45, 0.0  ;;  %v1375_v48 = vpop.f32.mrf.mxu0  ;;  %v1388_v49 = vpop.f32.mrf.mxu1 }
 0x27a   :  { %1402 = vst [vmem:[%s2360_s9 + $0x20] sm:$0xff] %v1394_v46 }
 0x27b   :  { %1403 = vst [vmem:[%s2360_s9 + $0x28] sm:$0xff] %v1395_v47 }
 0x27d   :  { %v1349_v50 = vpop.f32.mrf.mxu2  ;;  %v1362_v51 = vpop.f32.mrf.mxu3 }
 0x27e   :  { %1410 = vsyncpa [#allocation3], 1 }
 0x27f   :  { %1411 = vsyncpa [#allocation5], 1 }

</bundles_post_ra>
